<compile_context>
chip_gen: v7x
topology: tpu7x:2x2x1
jax: 0.10.0
libtpu: 0.0.40
codegen_flags: <defaults>
</compile_context>

<pallas_src>
import jax
import jax.numpy as jnp
from jax.experimental import pallas as pl
from jax.experimental.pallas import tpu as pltpu

BN_EPS = 1e-5


def _round_up(x, m):
    return ((x + m - 1) // m) * m


# ----------------------------------------------------------------------------
# Fused Pallas kernel:  y = [relu]( (x @ w) * scale + shift [+ residual] )
# ----------------------------------------------------------------------------
def _make_fused_kernel(has_residual, apply_relu, single_k):
    def kernel(x_ref, w_ref, s_ref, b_ref, *rest):
        if has_residual:
            r_ref, rest = rest[0], rest[1:]
        else:
            r_ref = None
        if single_k:
            (o_ref,) = rest
        else:
            o_ref, acc_ref = rest

        def epilogue(acc):
            y = acc * s_ref[...] + b_ref[...]        # folded BN (fp32)
            if has_residual:
                y = y + r_ref[...].astype(jnp.float32)
            if apply_relu:
                y = jnp.maximum(y, 0.0)
            o_ref[...] = y.astype(o_ref.dtype)

        if single_k:
            # One MXU matmul, fp32 accumulation, epilogue straight from the
            # result — no VMEM accumulator round trip.
            epilogue(jnp.dot(x_ref[...], w_ref[...],
                             preferred_element_type=jnp.float32))
        else:
            k = pl.program_id(2)

            @pl.when(k == 0)
            def _():
                acc_ref[...] = jnp.zeros_like(acc_ref)

            acc_ref[...] += jnp.dot(x_ref[...], w_ref[...],
                                    preferred_element_type=jnp.float32)

            @pl.when(k == pl.num_programs(2) - 1)
            def _():
                epilogue(acc_ref[...])

    return kernel


def fused_matmul(x, w, scale, shift, residual=None, relu=False,
                 out_dtype=jnp.float32):
    """Tiled MXU matmul with fused BN scale/shift, residual add and ReLU."""
    M, K = x.shape
    K2, N = w.shape
    assert K == K2

    # --- adaptive tiles / padding ------------------------------------------
    # M: sublane dim of x and out.
    if M > 256:
        TM = 256
        Mp = _round_up(M, TM)
    else:
        Mp = _round_up(M, 16)
        TM = Mp
    # K: lane dim of x / sublane dim of w.  Keep one full-extent block for
    # small K (no wasteful 128-padding); only tile when genuinely deep.
    if K > 2048:
        TK = 512
        Kp = _round_up(K, TK)
    else:
        Kp = _round_up(K, 16)
        TK = Kp
    # N: lane dim of w and out -> pad to a multiple of 128 (lane-dense,
    # unmasked stores); cap the tile at 512 (keeps VMEM well under limits).
    Np = _round_up(N, 128)
    TN = min(Np, 512)
    Np = _round_up(Np, TN)

    xp = jnp.pad(x, ((0, Mp - M), (0, Kp - K))).astype(jnp.bfloat16)
    wp = jnp.pad(w, ((0, Kp - K), (0, Np - N))).astype(jnp.bfloat16)
    sp = jnp.pad(scale.astype(jnp.float32).reshape(1, N), ((0, 0), (0, Np - N)))
    bp = jnp.pad(shift.astype(jnp.float32).reshape(1, N), ((0, 0), (0, Np - N)))

    has_res = residual is not None
    single_k = (Kp // TK) == 1

    in_specs = [
        pl.BlockSpec((TM, TK), lambda i, j, k: (i, k)),
        pl.BlockSpec((TK, TN), lambda i, j, k: (k, j)),
        pl.BlockSpec((1, TN), lambda i, j, k: (0, j)),
        pl.BlockSpec((1, TN), lambda i, j, k: (0, j)),
    ]
    args = [xp, wp, sp, bp]
    if has_res:
        rp = jnp.pad(residual, ((0, Mp - M), (0, Np - N)))  # keep its dtype
        in_specs.append(pl.BlockSpec((TM, TN), lambda i, j, k: (i, j)))
        args.append(rp)

    scratch_shapes = [] if single_k else [pltpu.VMEM((TM, TN), jnp.float32)]

    out = pl.pallas_call(
        _make_fused_kernel(has_res, relu, single_k),
        out_shape=jax.ShapeDtypeStruct((Mp, Np), out_dtype),
        grid_spec=pltpu.PrefetchScalarGridSpec(
            num_scalar_prefetch=0,
            grid=(Mp // TM, Np // TN, Kp // TK),
            in_specs=in_specs,
            out_specs=pl.BlockSpec((TM, TN), lambda i, j, k: (i, j)),
            scratch_shapes=scratch_shapes,
        ),
        compiler_params=pltpu.CompilerParams(
            dimension_semantics=("parallel", "parallel", "arbitrary")),
    )(*args)
    return out[:M, :N]


# ----------------------------------------------------------------------------
# Conv3d as im2col + fused matmul (glue in plain JAX)
# ----------------------------------------------------------------------------
def im2col_3d(x, stride):
    """x: [N, D, H, W, C]; 3x3x3 kernel, padding=1 -> ([M, 27*C], out dims)."""
    n, d, h, w, c = x.shape
    do = (d - 1) // stride + 1
    ho = (h - 1) // stride + 1
    wo = (w - 1) // stride + 1
    xp = jnp.pad(x, ((0, 0), (1, 1), (1, 1), (1, 1), (0, 0)))
    patches = []
    for kd in range(3):
        for kh in range(3):
            for kw in range(3):
                patches.append(xp[:, kd:kd + do * stride:stride,
                                  kh:kh + ho * stride:stride,
                                  kw:kw + wo * stride:stride, :])
    p = jnp.stack(patches, axis=-2)          # [N, Do, Ho, Wo, 27, C]
    return p.reshape(n * do * ho * wo, 27 * c), (n, do, ho, wo)


def conv_bn(x, w_mat, bn, stride, relu, residual=None, ksize=3,
            out_dtype=jnp.float32):
    gamma, beta, mean, var = bn
    scale = gamma / jnp.sqrt(var + BN_EPS)
    shift = beta - mean * scale
    x = x.astype(jnp.bfloat16)               # emit patches directly in bf16
    if ksize == 3:
        patches, (n, do, ho, wo) = im2col_3d(x, stride)
    else:                                     # 1x1x1 shortcut projection
        xs = x[:, ::stride, ::stride, ::stride, :]
        n, do, ho, wo, c = xs.shape
        patches = xs.reshape(n * do * ho * wo, c)
    cout = w_mat.shape[1]
    res_flat = None
    if residual is not None:
        res_flat = residual.reshape(patches.shape[0], cout)
    out = fused_matmul(patches, w_mat, scale, shift,
                       residual=res_flat, relu=relu, out_dtype=out_dtype)
    return out.reshape(n, do, ho, wo, cout)


def residual_block_forward(params, x, stride):
    """ResidualBlock.forward: x [N, Cin, D, H, W] -> [N, Cout, Do, Ho, Wo]."""
    xl = jnp.transpose(x, (0, 2, 3, 4, 1))    # channels-last
    if 'ws' in params:                        # projection shortcut (1x1x1 + BN)
        sc = conv_bn(xl, params['ws'], params['bns'], stride, relu=False,
                     ksize=1, out_dtype=jnp.bfloat16)
    else:                                     # identity shortcut
        sc = xl
    # left branch: conv3x3(stride) -> BN -> ReLU -> conv3x3(1) -> BN
    h = conv_bn(xl, params['w1'], params['bn1'], stride, relu=True,
                out_dtype=jnp.bfloat16)
    # out = relu(BN2(conv2(h)) + shortcut)   (add + relu fused in the kernel)
    out = conv_bn(h, params['w2'], params['bn2'], 1, relu=True,
                  residual=sc, out_dtype=jnp.float32)
    return jnp.transpose(out, (0, 4, 1, 2, 3))


# ----------------------------------------------------------------------------
# Deterministic parameter initialization (shapes match the PyTorch __init__)
# ----------------------------------------------------------------------------
def _conv_w(key, cin, cout, k):
    fan_in = cin * k ** 3
    w = jax.random.normal(key, (k, k, k, cin, cout), jnp.float32)
    return (w / jnp.sqrt(float(fan_in))).reshape(k ** 3 * cin, cout)


def _bn(c):
    # (gamma, beta, running_mean, running_var) -- PyTorch BatchNorm3d defaults
    return (jnp.ones((c,), jnp.float32), jnp.zeros((c,), jnp.float32),
            jnp.zeros((c,), jnp.float32), jnp.ones((c,), jnp.float32))


def init_block_params(key, inchannel, outchannel, stride):
    k1, k2, k3 = jax.random.split(key, 3)
    p = {'w1': _conv_w(k1, inchannel, outchannel, 3), 'bn1': _bn(outchannel),
         'w2': _conv_w(k2, outchannel, outchannel, 3), 'bn2': _bn(outchannel)}
    if stride != 1 or inchannel != outchannel:
        p['ws'] = _conv_w(k3, inchannel, outchannel, 1)
        p['bns'] = _bn(outchannel)
    return p


if __name__ == "__main__":
    key = jax.random.PRNGKey(0)
    kp1, kp2, kx = jax.random.split(key, 3)

    # Block A: projection shortcut path (stride=2, 4 -> 8 channels)
    params_a = init_block_params(kp1, 4, 8, 2)
    # Block B: identity shortcut path (stride=1, 8 -> 8 channels)
    params_b = init_block_params(kp2, 8, 8, 1)

    # Small NCDHW input: batch=2, channels=4, spatial=8
    x = jax.random.normal(kx, (2, 4, 8, 8, 8), jnp.float32)

    @jax.jit
    def fwd(pa, pb, xin):
        y = residual_block_forward(pa, xin, 2)   # -> [2, 8, 4, 4, 4]
        y = residual_block_forward(pb, y, 1)     # -> [2, 8, 4, 4, 4]
        return y

    out = jax.block_until_ready(fwd(params_a, params_b, x))
    assert out.shape == (2, 8, 4, 4, 4)
    assert bool(jnp.all(jnp.isfinite(out)))
    assert bool(jnp.all(out >= 0.0))   # final ReLU
    print("KERNEL_OK")
</pallas_src>

<mosaic_0001>
module attributes {stable_mosaic.version = 11 : i64} {
  func.func @kernel(%arg0: i32, %arg1: i32, %arg2: i32, %arg3: memref<128x112xbf16, #tpu.memory_space<vmem>>, %arg4: memref<112x128xbf16, #tpu.memory_space<vmem>>, %arg5: memref<1x128xf32, #tpu.memory_space<vmem>>, %arg6: memref<1x128xf32, #tpu.memory_space<vmem>>, %arg7: memref<128x128xbf16, #tpu.memory_space<vmem>>) attributes {dimension_semantics = [#tpu.dimension_semantics<parallel>, #tpu.dimension_semantics<parallel>, #tpu.dimension_semantics<arbitrary>], iteration_bounds = array<i64: 1, 1, 1>, scalar_prefetch = 0 : i64, scratch_operands = 0 : i64, tpu.core_type = #tpu.core_type<tc>, window_params = [{transform_indices = @transform_0, window_bounds = array<i64: 128, 112>}, {transform_indices = @transform_1, window_bounds = array<i64: 112, 128>}, {transform_indices = @transform_2, window_bounds = array<i64: 1, 128>}, {transform_indices = @transform_3, window_bounds = array<i64: 1, 128>}, {transform_indices = @transform_4, window_bounds = array<i64: 128, 128>}]} {
    %c0 = arith.constant 0 : index
    %c0_0 = arith.constant 0 : index
    %0 = vector.load %arg3[%c0, %c0_0] : memref<128x112xbf16, #tpu.memory_space<vmem>>, vector<128x112xbf16>
    %c0_1 = arith.constant 0 : index
    %c0_2 = arith.constant 0 : index
    %1 = vector.load %arg4[%c0_1, %c0_2] : memref<112x128xbf16, #tpu.memory_space<vmem>>, vector<112x128xbf16>
    %cst = arith.constant dense<0.000000e+00> : vector<128x128xf32>
    %2 = tpu.matmul %0, %1, %cst {dimension_numbers = #tpu.dot_dimension_numbers<[1], [0], [0], [1], [0, 0, 1, 1], [], []>} : vector<128x112xbf16>, vector<112x128xbf16>, vector<128x128xf32> -> vector<128x128xf32>
    %c0_3 = arith.constant 0 : index
    %c0_4 = arith.constant 0 : index
    %3 = vector.load %arg5[%c0_3, %c0_4] : memref<1x128xf32, #tpu.memory_space<vmem>>, vector<1x128xf32>
    %4 = vector.broadcast %3 : vector<1x128xf32> to vector<128x128xf32>
    %5 = arith.mulf %2, %4 : vector<128x128xf32>
    %c0_5 = arith.constant 0 : index
    %c0_6 = arith.constant 0 : index
    %6 = vector.load %arg6[%c0_5, %c0_6] : memref<1x128xf32, #tpu.memory_space<vmem>>, vector<1x128xf32>
    %7 = vector.broadcast %6 : vector<1x128xf32> to vector<128x128xf32>
    %8 = arith.addf %5, %7 : vector<128x128xf32>
    %cst_7 = arith.constant 0.000000e+00 : f32
    %9 = vector.broadcast %cst_7 : f32 to vector<128x128xf32>
    %10 = arith.maximumf %8, %9 : vector<128x128xf32>
    %11 = arith.truncf %10 : vector<128x128xf32> to vector<128x128xbf16>
    %c0_8 = arith.constant 0 : index
    %c0_9 = arith.constant 0 : index
    %12 = vector.load %arg7[%c0_8, %c0_9] : memref<128x128xbf16, #tpu.memory_space<vmem>>, vector<128x128xbf16>
    tpu.vector_store %arg7[%c0_8, %c0_9], %11 {strides = array<i32>} : memref<128x128xbf16, #tpu.memory_space<vmem>>, vector<128x128xbf16>,
    return
  }
  func.func @transform_0(%arg0: i32, %arg1: i32, %arg2: i32) -> (i32, i32) {
    %c0_i32 = arith.constant 0 : i32
    return %arg0, %arg2 : i32, i32
  }
  func.func @transform_1(%arg0: i32, %arg1: i32, %arg2: i32) -> (i32, i32) {
    %c0_i32 = arith.constant 0 : i32
    return %arg2, %arg1 : i32, i32
  }
  func.func @transform_2(%arg0: i32, %arg1: i32, %arg2: i32) -> (i32, i32) {
    %c0_i32 = arith.constant 0 : i32
    %c0_i32_0 = arith.constant 0 : i32
    return %c0_i32, %arg1 : i32, i32
  }
  func.func @transform_3(%arg0: i32, %arg1: i32, %arg2: i32) -> (i32, i32) {
    %c0_i32 = arith.constant 0 : i32
    %c0_i32_0 = arith.constant 0 : i32
    return %c0_i32, %arg1 : i32, i32
  }
  func.func @transform_4(%arg0: i32, %arg1: i32, %arg2: i32) -> (i32, i32) {
    %c0_i32 = arith.constant 0 : i32
    return %arg0, %arg1 : i32, i32
  }
}

module attributes {stable_mosaic.version = 11 : i64} {
  func.func @kernel(%arg0: i32, %arg1: i32, %arg2: i32, %arg3: memref<128x16xbf16, #tpu.memory_space<vmem>>, %arg4: memref<16x128xbf16, #tpu.memory_space<vmem>>, %arg5: memref<1x128xf32, #tpu.memory_space<vmem>>, %arg6: memref<1x128xf32, #tpu.memory_space<vmem>>, %arg7: memref<128x128xbf16, #tpu.memory_space<vmem>>) attributes {dimension_semantics = [#tpu.dimension_semantics<parallel>, #tpu.dimension_semantics<parallel>, #tpu.dimension_semantics<arbitrary>], iteration_bounds = array<i64: 1, 1, 1>, scalar_prefetch = 0 : i64, scratch_operands = 0 : i64, tpu.core_type = #tpu.core_type<tc>, window_params = [{transform_indices = @transform_0, window_bounds = array<i64: 128, 16>}, {transform_indices = @transform_1, window_bounds = array<i64: 16, 128>}, {transform_indices = @transform_2, window_bounds = array<i64: 1, 128>}, {transform_indices = @transform_3, window_bounds = array<i64: 1, 128>}, {transform_indices = @transform_4, window_bounds = array<i64: 128, 128>}]} {
    %c0 = arith.constant 0 : index
    %c0_0 = arith.constant 0 : index
    %0 = vector.load %arg3[%c0, %c0_0] : memref<128x16xbf16, #tpu.memory_space<vmem>>, vector<128x16xbf16>
    %c0_1 = arith.constant 0 : index
    %c0_2 = arith.constant 0 : index
    %1 = vector.load %arg4[%c0_1, %c0_2] : memref<16x128xbf16, #tpu.memory_space<vmem>>, vector<16x128xbf16>
    %cst = arith.constant dense<0.000000e+00> : vector<128x128xf32>
    %2 = tpu.matmul %0, %1, %cst {dimension_numbers = #tpu.dot_dimension_numbers<[1], [0], [0], [1], [0, 0, 1, 1], [], []>} : vector<128x16xbf16>, vector<16x128xbf16>, vector<128x128xf32> -> vector<128x128xf32>
    %c0_3 = arith.constant 0 : index
    %c0_4 = arith.constant 0 : index
    %3 = vector.load %arg5[%c0_3, %c0_4] : memref<1x128xf32, #tpu.memory_space<vmem>>, vector<1x128xf32>
    %4 = vector.broadcast %3 : vector<1x128xf32> to vector<128x128xf32>
    %5 = arith.mulf %2, %4 : vector<128x128xf32>
    %c0_5 = arith.constant 0 : index
    %c0_6 = arith.constant 0 : index
    %6 = vector.load %arg6[%c0_5, %c0_6] : memref<1x128xf32, #tpu.memory_space<vmem>>, vector<1x128xf32>
    %7 = vector.broadcast %6 : vector<1x128xf32> to vector<128x128xf32>
    %8 = arith.addf %5, %7 : vector<128x128xf32>
    %9 = arith.truncf %8 : vector<128x128xf32> to vector<128x128xbf16>
    %c0_7 = arith.constant 0 : index
    %c0_8 = arith.constant 0 : index
    %10 = vector.load %arg7[%c0_7, %c0_8] : memref<128x128xbf16, #tpu.memory_space<vmem>>, vector<128x128xbf16>
    tpu.vector_store %arg7[%c0_7, %c0_8], %9 {strides = array<i32>} : memref<128x128xbf16, #tpu.memory_space<vmem>>, vector<128x128xbf16>,
    return
  }
  func.func @transform_0(%arg0: i32, %arg1: i32, %arg2: i32) -> (i32, i32) {
    %c0_i32 = arith.constant 0 : i32
    return %arg0, %arg2 : i32, i32
  }
  func.func @transform_1(%arg0: i32, %arg1: i32, %arg2: i32) -> (i32, i32) {
    %c0_i32 = arith.constant 0 : i32
    return %arg2, %arg1 : i32, i32
  }
  func.func @transform_2(%arg0: i32, %arg1: i32, %arg2: i32) -> (i32, i32) {
    %c0_i32 = arith.constant 0 : i32
    %c0_i32_0 = arith.constant 0 : i32
    return %c0_i32, %arg1 : i32, i32
  }
  func.func @transform_3(%arg0: i32, %arg1: i32, %arg2: i32) -> (i32, i32) {
    %c0_i32 = arith.constant 0 : i32
    %c0_i32_0 = arith.constant 0 : i32
    return %c0_i32, %arg1 : i32, i32
  }
  func.func @transform_4(%arg0: i32, %arg1: i32, %arg2: i32) -> (i32, i32) {
    %c0_i32 = arith.constant 0 : i32
    return %arg0, %arg1 : i32, i32
  }
}

module attributes {stable_mosaic.version = 11 : i64} {
  func.func @kernel(%arg0: i32, %arg1: i32, %arg2: i32, %arg3: memref<128x224xbf16, #tpu.memory_space<vmem>>, %arg4: memref<224x128xbf16, #tpu.memory_space<vmem>>, %arg5: memref<1x128xf32, #tpu.memory_space<vmem>>, %arg6: memref<1x128xf32, #tpu.memory_space<vmem>>, %arg7: memref<128x128xbf16, #tpu.memory_space<vmem>>, %arg8: memref<128x128xf32, #tpu.memory_space<vmem>>) attributes {dimension_semantics = [#tpu.dimension_semantics<parallel>, #tpu.dimension_semantics<parallel>, #tpu.dimension_semantics<arbitrary>], iteration_bounds = array<i64: 1, 1, 1>, scalar_prefetch = 0 : i64, scratch_operands = 0 : i64, tpu.core_type = #tpu.core_type<tc>, window_params = [{transform_indices = @transform_0, window_bounds = array<i64: 128, 224>}, {transform_indices = @transform_1, window_bounds = array<i64: 224, 128>}, {transform_indices = @transform_2, window_bounds = array<i64: 1, 128>}, {transform_indices = @transform_3, window_bounds = array<i64: 1, 128>}, {transform_indices = @transform_4, window_bounds = array<i64: 128, 128>}, {transform_indices = @transform_5, window_bounds = array<i64: 128, 128>}]} {
    %c0 = arith.constant 0 : index
    %c0_0 = arith.constant 0 : index
    %0 = vector.load %arg3[%c0, %c0_0] : memref<128x224xbf16, #tpu.memory_space<vmem>>, vector<128x224xbf16>
    %c0_1 = arith.constant 0 : index
    %c0_2 = arith.constant 0 : index
    %1 = vector.load %arg4[%c0_1, %c0_2] : memref<224x128xbf16, #tpu.memory_space<vmem>>, vector<224x128xbf16>
    %cst = arith.constant dense<0.000000e+00> : vector<128x128xf32>
    %2 = tpu.matmul %0, %1, %cst {dimension_numbers = #tpu.dot_dimension_numbers<[1], [0], [0], [1], [0, 0, 1, 1], [], []>} : vector<128x224xbf16>, vector<224x128xbf16>, vector<128x128xf32> -> vector<128x128xf32>
    %c0_3 = arith.constant 0 : index
    %c0_4 = arith.constant 0 : index
    %3 = vector.load %arg5[%c0_3, %c0_4] : memref<1x128xf32, #tpu.memory_space<vmem>>, vector<1x128xf32>
    %4 = vector.broadcast %3 : vector<1x128xf32> to vector<128x128xf32>
    %5 = arith.mulf %2, %4 : vector<128x128xf32>
    %c0_5 = arith.constant 0 : index
    %c0_6 = arith.constant 0 : index
    %6 = vector.load %arg6[%c0_5, %c0_6] : memref<1x128xf32, #tpu.memory_space<vmem>>, vector<1x128xf32>
    %7 = vector.broadcast %6 : vector<1x128xf32> to vector<128x128xf32>
    %8 = arith.addf %5, %7 : vector<128x128xf32>
    %c0_7 = arith.constant 0 : index
    %c0_8 = arith.constant 0 : index
    %9 = vector.load %arg7[%c0_7, %c0_8] : memref<128x128xbf16, #tpu.memory_space<vmem>>, vector<128x128xbf16>
    %10 = arith.extf %9 : vector<128x128xbf16> to vector<128x128xf32>
    %11 = arith.addf %8, %10 : vector<128x128xf32>
    %cst_9 = arith.constant 0.000000e+00 : f32
    %12 = vector.broadcast %cst_9 : f32 to vector<128x128xf32>
    %13 = arith.maximumf %11, %12 : vector<128x128xf32>
    %c0_10 = arith.constant 0 : index
    %c0_11 = arith.constant 0 : index
    %14 = vector.load %arg8[%c0_10, %c0_11] : memref<128x128xf32, #tpu.memory_space<vmem>>, vector<128x128xf32>
    tpu.vector_store %arg8[%c0_10, %c0_11], %13 {strides = array<i32>} : memref<128x128xf32, #tpu.memory_space<vmem>>, vector<128x128xf32>,
    return
  }
  func.func @transform_0(%arg0: i32, %arg1: i32, %arg2: i32) -> (i32, i32) {
    %c0_i32 = arith.constant 0 : i32
    return %arg0, %arg2 : i32, i32
  }
  func.func @transform_1(%arg0: i32, %arg1: i32, %arg2: i32) -> (i32, i32) {
    %c0_i32 = arith.constant 0 : i32
    return %arg2, %arg1 : i32, i32
  }
  func.func @transform_2(%arg0: i32, %arg1: i32, %arg2: i32) -> (i32, i32) {
    %c0_i32 = arith.constant 0 : i32
    %c0_i32_0 = arith.constant 0 : i32
    return %c0_i32, %arg1 : i32, i32
  }
  func.func @transform_3(%arg0: i32, %arg1: i32, %arg2: i32) -> (i32, i32) {
    %c0_i32 = arith.constant 0 : i32
    %c0_i32_0 = arith.constant 0 : i32
    return %c0_i32, %arg1 : i32, i32
  }
  func.func @transform_4(%arg0: i32, %arg1: i32, %arg2: i32) -> (i32, i32) {
    %c0_i32 = arith.constant 0 : i32
    return %arg0, %arg1 : i32, i32
  }
  func.func @transform_5(%arg0: i32, %arg1: i32, %arg2: i32) -> (i32, i32) {
    %c0_i32 = arith.constant 0 : i32
    return %arg0, %arg1 : i32, i32
  }
}

module attributes {stable_mosaic.version = 11 : i64} {
  func.func @kernel(%arg0: i32, %arg1: i32, %arg2: i32, %arg3: memref<128x224xbf16, #tpu.memory_space<vmem>>, %arg4: memref<224x128xbf16, #tpu.memory_space<vmem>>, %arg5: memref<1x128xf32, #tpu.memory_space<vmem>>, %arg6: memref<1x128xf32, #tpu.memory_space<vmem>>, %arg7: memref<128x128xbf16, #tpu.memory_space<vmem>>) attributes {dimension_semantics = [#tpu.dimension_semantics<parallel>, #tpu.dimension_semantics<parallel>, #tpu.dimension_semantics<arbitrary>], iteration_bounds = array<i64: 1, 1, 1>, scalar_prefetch = 0 : i64, scratch_operands = 0 : i64, tpu.core_type = #tpu.core_type<tc>, window_params = [{transform_indices = @transform_0, window_bounds = array<i64: 128, 224>}, {transform_indices = @transform_1, window_bounds = array<i64: 224, 128>}, {transform_indices = @transform_2, window_bounds = array<i64: 1, 128>}, {transform_indices = @transform_3, window_bounds = array<i64: 1, 128>}, {transform_indices = @transform_4, window_bounds = array<i64: 128, 128>}]} {
    %c0 = arith.constant 0 : index
    %c0_0 = arith.constant 0 : index
    %0 = vector.load %arg3[%c0, %c0_0] : memref<128x224xbf16, #tpu.memory_space<vmem>>, vector<128x224xbf16>
    %c0_1 = arith.constant 0 : index
    %c0_2 = arith.constant 0 : index
    %1 = vector.load %arg4[%c0_1, %c0_2] : memref<224x128xbf16, #tpu.memory_space<vmem>>, vector<224x128xbf16>
    %cst = arith.constant dense<0.000000e+00> : vector<128x128xf32>
    %2 = tpu.matmul %0, %1, %cst {dimension_numbers = #tpu.dot_dimension_numbers<[1], [0], [0], [1], [0, 0, 1, 1], [], []>} : vector<128x224xbf16>, vector<224x128xbf16>, vector<128x128xf32> -> vector<128x128xf32>
    %c0_3 = arith.constant 0 : index
    %c0_4 = arith.constant 0 : index
    %3 = vector.load %arg5[%c0_3, %c0_4] : memref<1x128xf32, #tpu.memory_space<vmem>>, vector<1x128xf32>
    %4 = vector.broadcast %3 : vector<1x128xf32> to vector<128x128xf32>
    %5 = arith.mulf %2, %4 : vector<128x128xf32>
    %c0_5 = arith.constant 0 : index
    %c0_6 = arith.constant 0 : index
    %6 = vector.load %arg6[%c0_5, %c0_6] : memref<1x128xf32, #tpu.memory_space<vmem>>, vector<1x128xf32>
    %7 = vector.broadcast %6 : vector<1x128xf32> to vector<128x128xf32>
    %8 = arith.addf %5, %7 : vector<128x128xf32>
    %cst_7 = arith.constant 0.000000e+00 : f32
    %9 = vector.broadcast %cst_7 : f32 to vector<128x128xf32>
    %10 = arith.maximumf %8, %9 : vector<128x128xf32>
    %11 = arith.truncf %10 : vector<128x128xf32> to vector<128x128xbf16>
    %c0_8 = arith.constant 0 : index
    %c0_9 = arith.constant 0 : index
    %12 = vector.load %arg7[%c0_8, %c0_9] : memref<128x128xbf16, #tpu.memory_space<vmem>>, vector<128x128xbf16>
    tpu.vector_store %arg7[%c0_8, %c0_9], %11 {strides = array<i32>} : memref<128x128xbf16, #tpu.memory_space<vmem>>, vector<128x128xbf16>,
    return
  }
  func.func @transform_0(%arg0: i32, %arg1: i32, %arg2: i32) -> (i32, i32) {
    %c0_i32 = arith.constant 0 : i32
    return %arg0, %arg2 : i32, i32
  }
  func.func @transform_1(%arg0: i32, %arg1: i32, %arg2: i32) -> (i32, i32) {
    %c0_i32 = arith.constant 0 : i32
    return %arg2, %arg1 : i32, i32
  }
  func.func @transform_2(%arg0: i32, %arg1: i32, %arg2: i32) -> (i32, i32) {
    %c0_i32 = arith.constant 0 : i32
    %c0_i32_0 = arith.constant 0 : i32
    return %c0_i32, %arg1 : i32, i32
  }
  func.func @transform_3(%arg0: i32, %arg1: i32, %arg2: i32) -> (i32, i32) {
    %c0_i32 = arith.constant 0 : i32
    %c0_i32_0 = arith.constant 0 : i32
    return %c0_i32, %arg1 : i32, i32
  }
  func.func @transform_4(%arg0: i32, %arg1: i32, %arg2: i32) -> (i32, i32) {
    %c0_i32 = arith.constant 0 : i32
    return %arg0, %arg1 : i32, i32
  }
}

module attributes {stable_mosaic.version = 11 : i64} {
  func.func @kernel(%arg0: i32, %arg1: i32, %arg2: i32, %arg3: memref<128x224xbf16, #tpu.memory_space<vmem>>, %arg4: memref<224x128xbf16, #tpu.memory_space<vmem>>, %arg5: memref<1x128xf32, #tpu.memory_space<vmem>>, %arg6: memref<1x128xf32, #tpu.memory_space<vmem>>, %arg7: memref<128x128xf32, #tpu.memory_space<vmem>>, %arg8: memref<128x128xf32, #tpu.memory_space<vmem>>) attributes {dimension_semantics = [#tpu.dimension_semantics<parallel>, #tpu.dimension_semantics<parallel>, #tpu.dimension_semantics<arbitrary>], iteration_bounds = array<i64: 1, 1, 1>, scalar_prefetch = 0 : i64, scratch_operands = 0 : i64, tpu.core_type = #tpu.core_type<tc>, window_params = [{transform_indices = @transform_0, window_bounds = array<i64: 128, 224>}, {transform_indices = @transform_1, window_bounds = array<i64: 224, 128>}, {transform_indices = @transform_2, window_bounds = array<i64: 1, 128>}, {transform_indices = @transform_3, window_bounds = array<i64: 1, 128>}, {transform_indices = @transform_4, window_bounds = array<i64: 128, 128>}, {transform_indices = @transform_5, window_bounds = array<i64: 128, 128>}]} {
    %c0 = arith.constant 0 : index
    %c0_0 = arith.constant 0 : index
    %0 = vector.load %arg3[%c0, %c0_0] : memref<128x224xbf16, #tpu.memory_space<vmem>>, vector<128x224xbf16>
    %c0_1 = arith.constant 0 : index
    %c0_2 = arith.constant 0 : index
    %1 = vector.load %arg4[%c0_1, %c0_2] : memref<224x128xbf16, #tpu.memory_space<vmem>>, vector<224x128xbf16>
    %cst = arith.constant dense<0.000000e+00> : vector<128x128xf32>
    %2 = tpu.matmul %0, %1, %cst {dimension_numbers = #tpu.dot_dimension_numbers<[1], [0], [0], [1], [0, 0, 1, 1], [], []>} : vector<128x224xbf16>, vector<224x128xbf16>, vector<128x128xf32> -> vector<128x128xf32>
    %c0_3 = arith.constant 0 : index
    %c0_4 = arith.constant 0 : index
    %3 = vector.load %arg5[%c0_3, %c0_4] : memref<1x128xf32, #tpu.memory_space<vmem>>, vector<1x128xf32>
    %4 = vector.broadcast %3 : vector<1x128xf32> to vector<128x128xf32>
    %5 = arith.mulf %2, %4 : vector<128x128xf32>
    %c0_5 = arith.constant 0 : index
    %c0_6 = arith.constant 0 : index
    %6 = vector.load %arg6[%c0_5, %c0_6] : memref<1x128xf32, #tpu.memory_space<vmem>>, vector<1x128xf32>
    %7 = vector.broadcast %6 : vector<1x128xf32> to vector<128x128xf32>
    %8 = arith.addf %5, %7 : vector<128x128xf32>
    %c0_7 = arith.constant 0 : index
    %c0_8 = arith.constant 0 : index
    %9 = vector.load %arg7[%c0_7, %c0_8] : memref<128x128xf32, #tpu.memory_space<vmem>>, vector<128x128xf32>
    %10 = arith.addf %8, %9 : vector<128x128xf32>
    %cst_9 = arith.constant 0.000000e+00 : f32
    %11 = vector.broadcast %cst_9 : f32 to vector<128x128xf32>
    %12 = arith.maximumf %10, %11 : vector<128x128xf32>
    %c0_10 = arith.constant 0 : index
    %c0_11 = arith.constant 0 : index
    %13 = vector.load %arg8[%c0_10, %c0_11] : memref<128x128xf32, #tpu.memory_space<vmem>>, vector<128x128xf32>
    tpu.vector_store %arg8[%c0_10, %c0_11], %12 {strides = array<i32>} : memref<128x128xf32, #tpu.memory_space<vmem>>, vector<128x128xf32>,
    return
  }
  func.func @transform_0(%arg0: i32, %arg1: i32, %arg2: i32) -> (i32, i32) {
    %c0_i32 = arith.constant 0 : i32
    return %arg0, %arg2 : i32, i32
  }
  func.func @transform_1(%arg0: i32, %arg1: i32, %arg2: i32) -> (i32, i32) {
    %c0_i32 = arith.constant 0 : i32
    return %arg2, %arg1 : i32, i32
  }
  func.func @transform_2(%arg0: i32, %arg1: i32, %arg2: i32) -> (i32, i32) {
    %c0_i32 = arith.constant 0 : i32
    %c0_i32_0 = arith.constant 0 : i32
    return %c0_i32, %arg1 : i32, i32
  }
  func.func @transform_3(%arg0: i32, %arg1: i32, %arg2: i32) -> (i32, i32) {
    %c0_i32 = arith.constant 0 : i32
    %c0_i32_0 = arith.constant 0 : i32
    return %c0_i32, %arg1 : i32, i32
  }
  func.func @transform_4(%arg0: i32, %arg1: i32, %arg2: i32) -> (i32, i32) {
    %c0_i32 = arith.constant 0 : i32
    return %arg0, %arg1 : i32, i32
  }
  func.func @transform_5(%arg0: i32, %arg1: i32, %arg2: i32) -> (i32, i32) {
    %c0_i32 = arith.constant 0 : i32
    return %arg0, %arg1 : i32, i32
  }
}

</mosaic_0001>

<bundles_post_ra>
// kernel: fwd.6
= control target key start
LH: loop header
LB: loop body
LE: loop exit
PB: predicated region body
PF: predicated region fallthrough
CT: control target
= control target key end

     0   :  { %vm130_vm0 = vcmask 916480   ;;  %s702_s1 = inlined_call_operand.vmem [shape: bf16[112,128], index: 1, kind: input, shape index: {}]   ;;  %s703_s0 = inlined_call_operand.vmem [shape: bf16[128,112], index: 0, kind: input, shape index: {}]   ;;  %s704_s2 = inlined_call_operand.vmem [shape: f32[1,128], index: 2, kind: input, shape index: {}]   ;;  %s705_s3 = inlined_call_operand.vmem [shape: f32[1,128], index: 3, kind: input, shape index: {}]   ;;  %s706_s4 = inlined_call_operand.vmem [shape: bf16[128,128], index: 4, kind: output, shape index: {}]  }
   0x1   :  { %v561_v0 = vld [vmem:[%s702_s1] sm:$0xff]   ;;  %v562_v1 = vld [vmem:[%s702_s1 + $0x8] sm:$0xff]   ;;  %v563_v2 = vld [vmem:[%s702_s1 + $0x10] sm:$0xff]  }
   0x2   :  { %517 = vmatprep.subr.bf16.mxu0 %v561_v0  ;;  %547 = vmatprep.subr.bf16.mxu1 %v561_v0  ;;  %v564_v3 = vld [vmem:[%s702_s1 + $0x18] sm:$0xff]   ;;  %v568_v4 = vld [vmem:[%s703_s0] sm:$0xff]   ;;  %v566_v7 = vld [vmem:[%s702_s1 + $0x28] sm:$0xff]  }
   0x3   :  { %518 = vmatpush3.bf16.msra.mxu0 %v561_v0  ;;  %554 = vmatpush3.bf16.msra.mxu1 %v561_v0  ;;  %v569_v5 = vld [vmem:[%s703_s0 + $0x20] sm:$0xff]   ;;  %v567_v8 = vld [vmem:[%s702_s1 + $0x30] sm:$0xff]   ;;  %v570_v9 = vld [vmem:[%s703_s0 + $0x8] sm:$0xff]  }
   0x4   :  { %519 = vmatprep.subr.bf16.mxu0 %v562_v1  ;;  %548 = vmatprep.subr.bf16.mxu1 %v562_v1  ;;  %v565_v6 = vld [vmem:[%s702_s1 + $0x20] sm:$0xff]   ;;  %v571_v10 = vld [vmem:[%s703_s0 + $0x28] sm:$0xff]   ;;  %v572_v11 = vld [vmem:[%s703_s0 + $0x10] sm:$0xff]  }
   0x5   :  { %531 = vmatprep.mubr.msk.bf16.mxu0 %vm130_vm0, %v568_v4  ;;  %539 = vmatprep.mubr.msk.bf16.mxu1 %vm130_vm0, %v569_v5  ;;  %v573_v12 = vld [vmem:[%s703_s0 + $0x30] sm:$0xff]   ;;  %v574_v13 = vld [vmem:[%s703_s0 + $0x18] sm:$0xff]   ;;  %v421_v15 = vld [vmem:[%s704_s2] ss:$0 sm:$0xff] }
   0x6   :  { %v575_v14 = vld [vmem:[%s703_s0 + $0x38] sm:$0xff]   ;;  %v660_v17 = vld [vmem:[%s705_s3] ss:$0 sm:$0xff] }
   0x7   :  { %520 = vmatpush3.bf16.msra.mxu0 %v562_v1  ;;  %555 = vmatpush3.bf16.msra.mxu1 %v562_v1 }
   0x8   :  { %521 = vmatprep.subr.bf16.mxu0 %v563_v2  ;;  %549 = vmatprep.subr.bf16.mxu1 %v563_v2 }
   0xb   :  { %522 = vmatpush3.bf16.msra.mxu0 %v563_v2  ;;  %556 = vmatpush3.bf16.msra.mxu1 %v563_v2 }
   0xc   :  { %523 = vmatprep.subr.bf16.mxu0 %v564_v3  ;;  %550 = vmatprep.subr.bf16.mxu1 %v564_v3 }
   0xf   :  { %524 = vmatpush3.bf16.msra.mxu0 %v564_v3  ;;  %557 = vmatpush3.bf16.msra.mxu1 %v564_v3 }
  0x10   :  { %525 = vmatprep.subr.bf16.mxu0 %v565_v6  ;;  %551 = vmatprep.subr.bf16.mxu1 %v565_v6 }
  0x13   :  { %526 = vmatpush3.bf16.msra.mxu0 %v565_v6  ;;  %558 = vmatpush3.bf16.msra.mxu1 %v565_v6 }
  0x14   :  { %527 = vmatprep.subr.bf16.mxu0 %v566_v7  ;;  %552 = vmatprep.subr.bf16.mxu1 %v566_v7 }
  0x17   :  { %528 = vmatpush3.bf16.msra.mxu0 %v566_v7  ;;  %559 = vmatpush3.bf16.msra.mxu1 %v566_v7 }
  0x18   :  { %529 = vmatprep.subr.bf16.mxu0 %v567_v8  ;;  %553 = vmatprep.subr.bf16.mxu1 %v567_v8 }
  0x1b   :  { %530 = vmatpush3.bf16.msra.mxu0 %v567_v8  ;;  %560 = vmatpush3.bf16.msra.mxu1 %v567_v8 }
  0x1e   :  { %532 = vmatmul.mubr.msk.bf16.vlgmr.msra.gmra.mrb[0].mxu0 %vm130_vm0, %v570_v9  ;;  %540 = vmatmul.mubr.msk.bf16.vlgmr.msra.gmra.mrb[0].mxu1 %vm130_vm0, %v571_v10 }
  0x1f   :  { %535 = vmatprep.mubr.msk.bf16.mxu0 %vm130_vm0, %v572_v11  ;;  %543 = vmatprep.mubr.msk.bf16.mxu1 %vm130_vm0, %v573_v12 }
  0x26   :  { %536 = vmatmul.mubr.msk.bf16.gmra.mrb[4].mxu0 %vm130_vm0, %v574_v13  ;;  %544 = vmatmul.mubr.msk.bf16.gmra.mrb[4].mxu1 %vm130_vm0, %v575_v14 }
  0xf1   :  { %v533_v16 = vpop.f32.mrb[0].mxu0  ;;  %v541_v18 = vpop.f32.mrb[0].mxu1 }
  0xf2   :  { %v261_v19 = vmul.f32 %v533_v16, %v421_v15  ;;  %v269_v20 = vmul.f32 %v541_v18, %v421_v15  ;;  %v189_v21 = vpop.f32.mrb[1].mxu0  ;;  %v221_v22 = vpop.f32.mrb[1].mxu1 }
  0xf3   :  { %v259_v23 = vmul.f32 %v421_v15, %v189_v21  ;;  %v267_v24 = vmul.f32 %v421_v15, %v221_v22  ;;  %v534_v25 = vpop.f32.mrb[2].mxu0  ;;  %v542_v26 = vpop.f32.mrb[2].mxu1 }
  0xf4   :  { %v284_v27 = vadd.f32 %v660_v17, %v261_v19  ;;  %v292_v28 = vadd.f32 %v660_v17, %v269_v20  ;;  %v262_v29 = vmul.f32 %v534_v25, %v421_v15  ;;  %v270_v30 = vmul.f32 %v542_v26, %v421_v15  ;;  %v192_v31 = vpop.f32.mrb[3].mxu0  ;;  %v224_v32 = vpop.f32.mrb[3].mxu1 }
  0xf5   :  { %v282_v33 = vadd.f32 %v660_v17, %v259_v23  ;;  %v290_v34 = vadd.f32 %v660_v17, %v267_v24  ;;  %v260_v35 = vmul.f32 %v421_v15, %v192_v31  ;;  %v268_v36 = vmul.f32 %v421_v15, %v224_v32 }
  0xf6   :  { %v285_v37 = vadd.f32 %v660_v17, %v262_v29  ;;  %v293_v38 = vadd.f32 %v660_v17, %v270_v30  ;;  %v300_v41 = vmax.f32 %v284_v27, 0.0  ;;  %v308_v42 = vmax.f32 %v292_v28, 0.0 }
  0xf7   :  { %v283_v39 = vadd.f32 %v660_v17, %v260_v35  ;;  %v291_v40 = vadd.f32 %v660_v17, %v268_v36  ;;  %v298_v45 = vmax.f32 %v282_v33, 0.0  ;;  %v306_v46 = vmax.f32 %v290_v34, 0.0 }
  0xf8   :  { %v301_v43 = vmax.f32 %v285_v37, 0.0  ;;  %v309_v44 = vmax.f32 %v293_v38, 0.0 }
  0xf9   :  { %v299_v47 = vmax.f32 %v283_v39, 0.0  ;;  %v307_v48 = vmax.f32 %v291_v40, 0.0  ;;  %v537_v49 = vpop.f32.mrb[4].mxu0  ;;  %v545_v50 = vpop.f32.mrb[4].mxu1 }
  0xfa   :  { %v463_v51 = vpack.c.bf16 %v301_v43, %v300_v41  ;;  %v483_v52 = vpack.c.bf16 %v309_v44, %v308_v42  ;;  %v265_v53 = vmul.f32 %v537_v49, %v421_v15  ;;  %v273_v54 = vmul.f32 %v545_v50, %v421_v15  ;;  %v205_v55 = vpop.f32.mrb[5].mxu0  ;;  %v237_v56 = vpop.f32.mrb[5].mxu1 }
  0xfb   :  { %v458_v57 = vpack.c.bf16 %v299_v47, %v298_v45  ;;  %v478_v58 = vpack.c.bf16 %v307_v48, %v306_v46  ;;  %v263_v59 = vmul.f32 %v421_v15, %v205_v55  ;;  %v271_v60 = vmul.f32 %v421_v15, %v237_v56  ;;  %v538_v61 = vpop.f32.mrb[6].mxu0  ;;  %v546_v62 = vpop.f32.mrb[6].mxu1 }
  0xfc   :  { %495 = vst [vmem:[%s706_s4 + $0x8] sm:$0xff] %v463_v51   ;;  %499 = vst [vmem:[%s706_s4 + $0x28] sm:$0xff] %v483_v52   ;;  %v288_v63 = vadd.f32 %v660_v17, %v265_v53  ;;  %v296_v0 = vadd.f32 %v660_v17, %v273_v54  ;;  %v266_v1 = vmul.f32 %v538_v61, %v421_v15  ;;  %v208_v3 = vpop.f32.mrb[7].mxu0  ;;  %v240_v4 = vpop.f32.mrb[7].mxu1 }
  0xfd   :  { %v274_v2 = vmul.f32 %v546_v62, %v421_v15  ;;  %459 = vst [vmem:[%s706_s4] sm:$0xff] %v458_v57   ;;  %498 = vst [vmem:[%s706_s4 + $0x20] sm:$0xff] %v478_v58   ;;  %v286_v5 = vadd.f32 %v660_v17, %v263_v59  ;;  %v294_v6 = vadd.f32 %v660_v17, %v271_v60 }
  0xfe   :  { %v264_v7 = vmul.f32 %v421_v15, %v208_v3  ;;  %v272_v8 = vmul.f32 %v421_v15, %v240_v4  ;;  %v289_v9 = vadd.f32 %v660_v17, %v266_v1  ;;  %v304_v13 = vmax.f32 %v288_v63, 0.0 }
  0xff   :  { %v297_v10 = vadd.f32 %v660_v17, %v274_v2  ;;  %v312_v14 = vmax.f32 %v296_v0, 0.0  ;;  %v302_v19 = vmax.f32 %v286_v5, 0.0  ;;  %v310_v20 = vmax.f32 %v294_v6, 0.0 }
 0x100   :  { %v287_v11 = vadd.f32 %v660_v17, %v264_v7  ;;  %v295_v12 = vadd.f32 %v660_v17, %v272_v8  ;;  %v305_v16 = vmax.f32 %v289_v9, 0.0 }
 0x101   :  { %v313_v18 = vmax.f32 %v297_v10, 0.0 }
 0x102   :  { %v303_v21 = vmax.f32 %v287_v11, 0.0  ;;  %v311_v22 = vmax.f32 %v295_v12, 0.0  ;;  %v473_v23 = vpack.c.bf16 %v305_v16, %v304_v13 }
 0x103   :  { %v493_v24 = vpack.c.bf16 %v313_v18, %v312_v14 }
 0x104   :  { %v468_v25 = vpack.c.bf16 %v303_v21, %v302_v19  ;;  %v488_v15 = vpack.c.bf16 %v311_v22, %v310_v20  ;;  %497 = vst [vmem:[%s706_s4 + $0x18] sm:$0xff] %v473_v23  }
 0x105   :  { %501 = vst [vmem:[%s706_s4 + $0x38] sm:$0xff] %v493_v24  }
 0x106   :  { %496 = vst [vmem:[%s706_s4 + $0x10] sm:$0xff] %v468_v25   ;;  %500 = vst [vmem:[%s706_s4 + $0x30] sm:$0xff] %v488_v15  }

// kernel: fwd.5
= control target key start
LH: loop header
LB: loop body
LE: loop exit
PB: predicated region body
PF: predicated region fallthrough
CT: control target
= control target key end

     0   :  { %vm82_vm0 = vcmask 130048   ;;  %s560_s1 = inlined_call_operand.vmem [shape: bf16[16,128], index: 1, kind: input, shape index: {}]   ;;  %s561_s0 = inlined_call_operand.vmem [shape: bf16[128,16], index: 0, kind: input, shape index: {}]   ;;  %s562_s2 = inlined_call_operand.vmem [shape: f32[1,128], index: 2, kind: input, shape index: {}]   ;;  %s563_s3 = inlined_call_operand.vmem [shape: f32[1,128], index: 3, kind: input, shape index: {}]   ;;  %s564_s4 = inlined_call_operand.vmem [shape: bf16[128,128], index: 4, kind: output, shape index: {}]  }
   0x1   :  { %v461_v0 = vld [vmem:[%s560_s1] sm:$0xff]   ;;  %v464_v3 = vld [vmem:[%s561_s0 + $0x8] sm:$0xff]   ;;  %v466_v5 = vld [vmem:[%s561_s0 + $0x10] sm:$0xff]  }
   0x2   :  { %v462_v1 = vld [vmem:[%s561_s0] sm:$0xff]   ;;  %441 = vmatprep.subr.bf16.mxu0 %v461_v0  ;;  %459 = vmatprep.subr.bf16.mxu1 %v461_v0  ;;  %v465_v4 = vld [vmem:[%s561_s0 + $0x28] sm:$0xff]   ;;  %v467_v6 = vld [vmem:[%s561_s0 + $0x30] sm:$0xff]  }
   0x3   :  { %v463_v2 = vld [vmem:[%s561_s0 + $0x20] sm:$0xff]   ;;  %442 = vmatpush3.bf16.msra.mxu0 %v461_v0  ;;  %460 = vmatpush3.bf16.msra.mxu1 %v461_v0  ;;  %v468_v7 = vld [vmem:[%s561_s0 + $0x18] sm:$0xff]  }
   0x4   :  { %443 = vmatprep.mubr.msk.bf16.mxu0 %vm82_vm0, %v462_v1  ;;  %451 = vmatprep.mubr.msk.bf16.mxu1 %vm82_vm0, %v463_v2  ;;  %v469_v8 = vld [vmem:[%s561_s0 + $0x38] sm:$0xff]   ;;  %v351_v9 = vld [vmem:[%s562_s2] ss:$0 sm:$0xff] }
   0x5   :  { %v352_v16 = vld [vmem:[%s563_s3] ss:$0 sm:$0xff] }
   0x6   :  { %444 = vmatmul.mubr.msk.bf16.vlgmr.msra.gmra.mrb[0].mxu0 %vm82_vm0, %v464_v3  ;;  %452 = vmatmul.mubr.msk.bf16.vlgmr.msra.gmra.mrb[0].mxu1 %vm82_vm0, %v465_v4 }
   0x7   :  { %447 = vmatprep.mubr.msk.bf16.mxu0 %vm82_vm0, %v466_v5  ;;  %455 = vmatprep.mubr.msk.bf16.mxu1 %vm82_vm0, %v467_v6 }
   0xe   :  { %448 = vmatmul.mubr.msk.bf16.gmra.mrb[4].mxu0 %vm82_vm0, %v468_v7  ;;  %456 = vmatmul.mubr.msk.bf16.gmra.mrb[4].mxu1 %vm82_vm0, %v469_v8 }
  0xd9   :  { %v445_v10 = vpop.f32.mrb[0].mxu0  ;;  %v453_v11 = vpop.f32.mrb[0].mxu1 }
  0xda   :  { %v213_v12 = vmul.f32 %v445_v10, %v351_v9  ;;  %v221_v13 = vmul.f32 %v453_v11, %v351_v9  ;;  %v141_v14 = vpop.f32.mrb[1].mxu0  ;;  %v173_v15 = vpop.f32.mrb[1].mxu1 }
  0xdb   :  { %v211_v17 = vmul.f32 %v351_v9, %v141_v14  ;;  %v219_v18 = vmul.f32 %v351_v9, %v173_v15  ;;  %v446_v19 = vpop.f32.mrb[2].mxu0  ;;  %v454_v20 = vpop.f32.mrb[2].mxu1 }
  0xdc   :  { %v214_v21 = vmul.f32 %v446_v19, %v351_v9  ;;  %v222_v22 = vmul.f32 %v454_v20, %v351_v9  ;;  %v144_v23 = vpop.f32.mrb[3].mxu0  ;;  %v176_v24 = vpop.f32.mrb[3].mxu1  ;;  %v236_v27 = vadd.f32 %v352_v16, %v213_v12  ;;  %v244_v28 = vadd.f32 %v352_v16, %v221_v13 }
  0xdd   :  { %v212_v25 = vmul.f32 %v351_v9, %v144_v23  ;;  %v220_v26 = vmul.f32 %v351_v9, %v176_v24  ;;  %v234_v31 = vadd.f32 %v352_v16, %v211_v17  ;;  %v242_v32 = vadd.f32 %v352_v16, %v219_v18 }
  0xde   :  { %v237_v29 = vadd.f32 %v352_v16, %v214_v21  ;;  %v245_v30 = vadd.f32 %v352_v16, %v222_v22 }
  0xdf   :  { %v235_v33 = vadd.f32 %v352_v16, %v212_v25  ;;  %v243_v34 = vadd.f32 %v352_v16, %v220_v26 }
  0xe0   :  { %v393_v35 = vpack.c.bf16 %v237_v29, %v236_v27  ;;  %v413_v36 = vpack.c.bf16 %v245_v30, %v244_v28 }
  0xe1   :  { %v388_v37 = vpack.c.bf16 %v235_v33, %v234_v31  ;;  %v408_v38 = vpack.c.bf16 %v243_v34, %v242_v32  ;;  %v449_v39 = vpop.f32.mrb[4].mxu0  ;;  %v457_v40 = vpop.f32.mrb[4].mxu1 }
  0xe2   :  { %425 = vst [vmem:[%s564_s4 + $0x8] sm:$0xff] %v393_v35   ;;  %429 = vst [vmem:[%s564_s4 + $0x28] sm:$0xff] %v413_v36   ;;  %v217_v41 = vmul.f32 %v449_v39, %v351_v9  ;;  %v225_v42 = vmul.f32 %v457_v40, %v351_v9  ;;  %v157_v43 = vpop.f32.mrb[5].mxu0  ;;  %v189_v44 = vpop.f32.mrb[5].mxu1 }
  0xe3   :  { %389 = vst [vmem:[%s564_s4] sm:$0xff] %v388_v37   ;;  %428 = vst [vmem:[%s564_s4 + $0x20] sm:$0xff] %v408_v38   ;;  %v215_v45 = vmul.f32 %v351_v9, %v157_v43  ;;  %v223_v46 = vmul.f32 %v351_v9, %v189_v44  ;;  %v450_v47 = vpop.f32.mrb[6].mxu0  ;;  %v458_v48 = vpop.f32.mrb[6].mxu1 }
  0xe4   :  { %v218_v49 = vmul.f32 %v450_v47, %v351_v9  ;;  %v226_v50 = vmul.f32 %v458_v48, %v351_v9  ;;  %v160_v51 = vpop.f32.mrb[7].mxu0  ;;  %v192_v52 = vpop.f32.mrb[7].mxu1  ;;  %v240_v55 = vadd.f32 %v352_v16, %v217_v41  ;;  %v248_v56 = vadd.f32 %v352_v16, %v225_v42 }
  0xe5   :  { %v216_v53 = vmul.f32 %v351_v9, %v160_v51  ;;  %v224_v54 = vmul.f32 %v351_v9, %v192_v52  ;;  %v238_v59 = vadd.f32 %v352_v16, %v215_v45  ;;  %v246_v60 = vadd.f32 %v352_v16, %v223_v46 }
  0xe6   :  { %v241_v57 = vadd.f32 %v352_v16, %v218_v49  ;;  %v249_v58 = vadd.f32 %v352_v16, %v226_v50 }
  0xe7   :  { %v239_v61 = vadd.f32 %v352_v16, %v216_v53  ;;  %v247_v62 = vadd.f32 %v352_v16, %v224_v54 }
  0xe8   :  { %v403_v63 = vpack.c.bf16 %v241_v57, %v240_v55  ;;  %v423_v0 = vpack.c.bf16 %v249_v58, %v248_v56 }
  0xe9   :  { %v398_v1 = vpack.c.bf16 %v239_v61, %v238_v59  ;;  %v418_v2 = vpack.c.bf16 %v247_v62, %v246_v60 }
  0xea   :  { %427 = vst [vmem:[%s564_s4 + $0x18] sm:$0xff] %v403_v63   ;;  %431 = vst [vmem:[%s564_s4 + $0x38] sm:$0xff] %v423_v0  }
  0xeb   :  { %426 = vst [vmem:[%s564_s4 + $0x10] sm:$0xff] %v398_v1   ;;  %430 = vst [vmem:[%s564_s4 + $0x30] sm:$0xff] %v418_v2  }

// kernel: fwd.7
= control target key start
LH: loop header
LB: loop body
LE: loop exit
PB: predicated region body
PF: predicated region fallthrough
CT: control target
= control target key end

     0   :  { %v619_v0 = vmov 0   ;;  %vm221_vm0 = vcmask 785408   ;;  %s890_s1 = inlined_call_operand.vmem [shape: bf16[224,128], index: 1, kind: input, shape index: {}]   ;;  %s891_s0 = inlined_call_operand.vmem [shape: bf16[128,224], index: 0, kind: input, shape index: {}]   ;;  %s892_s2 = inlined_call_operand.vmem [shape: f32[1,128], index: 2, kind: input, shape index: {}]   ;;  %s893_s4 = inlined_call_operand.vmem [shape: bf16[128,128], index: 4, kind: input, shape index: {}]   ;;  %s894_s3 = inlined_call_operand.vmem [shape: f32[1,128], index: 3, kind: input, shape index: {}]   ;;  %s895_s5 = inlined_call_operand.vmem [shape: f32[128,128], index: 5, kind: output, shape index: {}]  }
   0x1   :  { %246 = vmatprep.subr.bf16.mxu0 %v619_v0  ;;  %552 = vmatprep.subr.bf16.mxu1 %v619_v0  ;;  %v581_v1 = vld [vmem:[%s890_s1] sm:$0xff]   ;;  %v582_v2 = vld [vmem:[%s890_s1 + $0x8] sm:$0xff]   ;;  %v583_v3 = vld [vmem:[%s890_s1 + $0x10] sm:$0xff]  }
   0x2   :  { %247 = vmatpush1.bf16.msra.mxu0 %v581_v1  ;;  %566 = vmatpush1.bf16.msra.mxu1 %v581_v1  ;;  %v584_v4 = vld [vmem:[%s890_s1 + $0x18] sm:$0xff]   ;;  %v585_v5 = vld [vmem:[%s890_s1 + $0x20] sm:$0xff]   ;;  %v586_v8 = vld [vmem:[%s890_s1 + $0x28] sm:$0xff]  }
   0x3   :  { %248 = vmatprep.subr.bf16.mxu0 %v619_v0  ;;  %553 = vmatprep.subr.bf16.mxu1 %v619_v0  ;;  %v597_v6 = vld [vmem:[%s891_s0 + $0x4] ss:$8 sps:$4 sm:$0xff]   ;;  %v587_v9 = vld [vmem:[%s890_s1 + $0x30] sm:$0xff]   ;;  %v588_v10 = vld [vmem:[%s890_s1 + $0x38] sm:$0xff]  }
   0x4   :  { %v600_v7 = vld [vmem:[%s891_s0 + $0x44] ss:$8 sps:$4 sm:$0xff]   ;;  %503 = vmatprep.mubr.msk.bf16.mxu0 %vm221_vm0, %v597_v6  ;;  %v591_v13 = vld [vmem:[%s890_s1 + $0x50] sm:$0xff]   ;;  %v592_v14 = vld [vmem:[%s890_s1 + $0x58] sm:$0xff]  }
   0x5   :  { %507 = vmatprep.mubr.msk.bf16.mxu1 %vm221_vm0, %v600_v7  ;;  %v589_v11 = vld [vmem:[%s890_s1 + $0x40] sm:$0xff]   ;;  %v590_v12 = vld [vmem:[%s890_s1 + $0x48] sm:$0xff]   ;;  %v601_v19 = vld [vmem:[%s891_s0 + $0x14] ss:$8 sps:$4 sm:$0xff]  }
   0x6   :  { %249 = vmatpush1.bf16.msra.mxu0 %v582_v2  ;;  %567 = vmatpush1.bf16.msra.mxu1 %v582_v2  ;;  %v593_v15 = vld [vmem:[%s890_s1 + $0x60] sm:$0xff]   ;;  %v594_v16 = vld [vmem:[%s890_s1 + $0x68] sm:$0xff]   ;;  %v603_v20 = vld [vmem:[%s891_s0 + $0x54] ss:$8 sps:$4 sm:$0xff]  }
   0x7   :  { %250 = vmatprep.subr.bf16.mxu0 %v619_v0  ;;  %554 = vmatprep.subr.bf16.mxu1 %v619_v0  ;;  %v595_v17 = vld [vmem:[%s891_s0] ss:$8 sps:$4 sm:$0xff]   ;;  %v605_v21 = vld [vmem:[%s891_s0 + $0x10] ss:$8 sps:$4 sm:$0xff]   ;;  %v607_v23 = vld [vmem:[%s891_s0 + $0x24] ss:$8 sps:$4 sm:$0xff]  }
   0x8   :  { %v598_v18 = vld [vmem:[%s891_s0 + $0x40] ss:$8 sps:$4 sm:$0xff]   ;;  %v606_v22 = vld [vmem:[%s891_s0 + $0x50] ss:$8 sps:$4 sm:$0xff]   ;;  %v609_v24 = vld [vmem:[%s891_s0 + $0x64] ss:$8 sps:$4 sm:$0xff]  }
   0x9   :  { %v611_v25 = vld [vmem:[%s891_s0 + $0x20] ss:$8 sps:$4 sm:$0xff]   ;;  %v613_v27 = vld [vmem:[%s891_s0 + $0x34] ss:$8 sps:$4 sm:$0xff]   ;;  %v617_v29 = vld [vmem:[%s891_s0 + $0x30] ss:$8 sps:$4 sm:$0xff]  }
   0xa   :  { %251 = vmatpush1.bf16.msra.mxu0 %v583_v3  ;;  %568 = vmatpush1.bf16.msra.mxu1 %v583_v3  ;;  %v612_v26 = vld [vmem:[%s891_s0 + $0x60] ss:$8 sps:$4 sm:$0xff]   ;;  %v615_v28 = vld [vmem:[%s891_s0 + $0x74] ss:$8 sps:$4 sm:$0xff]   ;;  %v618_v30 = vld [vmem:[%s891_s0 + $0x70] ss:$8 sps:$4 sm:$0xff]  }
   0xb   :  { %252 = vmatprep.subr.bf16.mxu0 %v619_v0  ;;  %555 = vmatprep.subr.bf16.mxu1 %v619_v0  ;;  %v779_v31 = vld [vmem:[%s892_s2] ss:$0 sm:$0xff]  ;;  %v545_v57 = vld [vmem:[%s893_s4 + $0x8] sm:$0xff]  }
   0xc   :  { %v514_v32 = vld [vmem:[%s893_s4] sm:$0xff]   ;;  %v549_v58 = vld [vmem:[%s893_s4 + $0x28] sm:$0xff]  }
   0xd   :  { %v548_v33 = vld [vmem:[%s893_s4 + $0x20] sm:$0xff]   ;;  %v515_v38 = vunpack.c.l.bf16 %v514_v32  ;;  %v516_v44 = vunpack.c.h.bf16 %v514_v32  ;;  %v535_v2 = vunpack.c.l.bf16 %v549_v58 }
   0xe   :  { %253 = vmatpush1.bf16.msra.mxu0 %v584_v4  ;;  %569 = vmatpush1.bf16.msra.mxu1 %v584_v4  ;;  %v790_v35 = vld [vmem:[%s894_s3] ss:$0 sm:$0xff]  ;;  %v531_v40 = vunpack.c.l.bf16 %v548_v33  ;;  %v532_v46 = vunpack.c.h.bf16 %v548_v33 }
   0xf   :  { %254 = vmatprep.subr.bf16.mxu0 %v619_v0  ;;  %556 = vmatprep.subr.bf16.mxu1 %v619_v0 }
  0x12   :  { %255 = vmatpush1.bf16.msra.mxu0 %v585_v5  ;;  %570 = vmatpush1.bf16.msra.mxu1 %v585_v5 }
  0x13   :  { %256 = vmatprep.subr.bf16.mxu0 %v619_v0  ;;  %557 = vmatprep.subr.bf16.mxu1 %v619_v0 }
  0x16   :  { %257 = vmatpush1.bf16.msra.mxu0 %v586_v8  ;;  %571 = vmatpush1.bf16.msra.mxu1 %v586_v8 }
  0x17   :  { %258 = vmatprep.subr.bf16.mxu0 %v619_v0  ;;  %558 = vmatprep.subr.bf16.mxu1 %v619_v0 }
  0x1a   :  { %259 = vmatpush1.bf16.msra.mxu0 %v587_v9  ;;  %572 = vmatpush1.bf16.msra.mxu1 %v587_v9 }
  0x1b   :  { %260 = vmatprep.subr.bf16.mxu0 %v619_v0  ;;  %559 = vmatprep.subr.bf16.mxu1 %v619_v0 }
  0x1e   :  { %261 = vmatpush1.bf16.msra.mxu0 %v588_v10  ;;  %573 = vmatpush1.bf16.msra.mxu1 %v588_v10  ;;  %v520_v10 = vunpack.c.h.bf16 %v545_v57 }
  0x1f   :  { %262 = vmatprep.subr.bf16.mxu0 %v619_v0  ;;  %560 = vmatprep.subr.bf16.mxu1 %v619_v0 }
  0x22   :  { %263 = vmatpush1.bf16.msra.mxu0 %v589_v11  ;;  %574 = vmatpush1.bf16.msra.mxu1 %v589_v11 }
  0x23   :  { %264 = vmatprep.subr.bf16.mxu0 %v619_v0  ;;  %561 = vmatprep.subr.bf16.mxu1 %v619_v0 }
  0x26   :  { %265 = vmatpush1.bf16.msra.mxu0 %v590_v12  ;;  %575 = vmatpush1.bf16.msra.mxu1 %v590_v12  ;;  %v536_v12 = vunpack.c.h.bf16 %v549_v58 }
  0x27   :  { %266 = vmatprep.subr.bf16.mxu0 %v619_v0  ;;  %562 = vmatprep.subr.bf16.mxu1 %v619_v0 }
  0x2a   :  { %267 = vmatpush1.bf16.msra.mxu0 %v591_v13  ;;  %576 = vmatpush1.bf16.msra.mxu1 %v591_v13 }
  0x2b   :  { %268 = vmatprep.subr.bf16.mxu0 %v619_v0  ;;  %563 = vmatprep.subr.bf16.mxu1 %v619_v0 }
  0x2e   :  { %269 = vmatpush1.bf16.msra.mxu0 %v592_v14  ;;  %577 = vmatpush1.bf16.msra.mxu1 %v592_v14 }
  0x2f   :  { %270 = vmatprep.subr.bf16.mxu0 %v619_v0  ;;  %564 = vmatprep.subr.bf16.mxu1 %v619_v0 }
  0x32   :  { %271 = vmatpush1.bf16.msra.mxu0 %v593_v15  ;;  %578 = vmatpush1.bf16.msra.mxu1 %v593_v15 }
  0x33   :  { %272 = vmatprep.subr.bf16.mxu0 %v619_v0  ;;  %565 = vmatprep.subr.bf16.mxu1 %v619_v0  ;;  %v519_v0 = vunpack.c.l.bf16 %v545_v57 }
  0x36   :  { %273 = vmatpush1.bf16.msra.mxu0 %v594_v16  ;;  %579 = vmatpush1.bf16.msra.mxu1 %v594_v16 }
  0x39   :  { %279 = vmatmul.mubr.bf16.vlgmr.msra.gmra.mrb[0].mxu0 %v595_v17  ;;  %311 = vmatmul.mubr.bf16.vlgmr.msra.gmra.mrb[0].mxu1 %v598_v18 }
  0x3a   :  { %504 = vmatprep.mubr.msk.bf16.mxu0 %vm221_vm0, %v601_v19  ;;  %508 = vmatprep.mubr.msk.bf16.mxu1 %vm221_vm0, %v603_v20 }
  0x41   :  { %287 = vmatmul.mubr.bf16.gmra.mrb[4].mxu0 %v605_v21  ;;  %319 = vmatmul.mubr.bf16.gmra.mrb[4].mxu1 %v606_v22 }
  0x42   :  { %505 = vmatprep.mubr.msk.bf16.mxu0 %vm221_vm0, %v607_v23  ;;  %509 = vmatprep.mubr.msk.bf16.mxu1 %vm221_vm0, %v609_v24  ;;  %v546_v23 = vld [vmem:[%s893_s4 + $0x10] sm:$0xff]  }
  0x43   :  { %v550_v24 = vld [vmem:[%s893_s4 + $0x30] sm:$0xff]  }
  0x44   :  { %v539_v33 = vunpack.c.l.bf16 %v550_v24 }
  0x49   :  { %295 = vmatmul.mubr.bf16.gmra.mrb[8].mxu0 %v611_v25  ;;  %327 = vmatmul.mubr.bf16.gmra.mrb[8].mxu1 %v612_v26 }
  0x4a   :  { %506 = vmatprep.mubr.msk.bf16.mxu0 %vm221_vm0, %v613_v27  ;;  %510 = vmatprep.mubr.msk.bf16.mxu1 %vm221_vm0, %v615_v28 }
  0x51   :  { %303 = vmatmul.mubr.bf16.gmra.mrb[12].mxu0 %v617_v29  ;;  %335 = vmatmul.mubr.bf16.gmra.mrb[12].mxu1 %v618_v30  ;;  %v523_v30 = vunpack.c.l.bf16 %v546_v23 }
 0x10c   :  { %v280_v34 = vpop.f32.mrb[0].mxu0  ;;  %v312_v36 = vpop.f32.mrb[0].mxu1 }
 0x10d   :  { %v350_v37 = vmul.f32 %v779_v31, %v280_v34  ;;  %v358_v39 = vmul.f32 %v779_v31, %v312_v36  ;;  %v282_v41 = vpop.f32.mrb[1].mxu0  ;;  %v314_v42 = vpop.f32.mrb[1].mxu1 }
 0x10e   :  { %v283_v43 = vpop.f32.mrb[2].mxu0  ;;  %v315_v45 = vpop.f32.mrb[2].mxu1  ;;  %v524_v42 = vunpack.c.h.bf16 %v546_v23 }
 0x10f   :  { %v373_v47 = vadd.f32 %v790_v35, %v350_v37  ;;  %v381_v48 = vadd.f32 %v790_v35, %v358_v39  ;;  %v351_v49 = vmul.f32 %v779_v31, %v283_v43  ;;  %v359_v50 = vmul.f32 %v779_v31, %v315_v45  ;;  %v285_v51 = vpop.f32.mrb[3].mxu0  ;;  %v317_v52 = vpop.f32.mrb[3].mxu1 }
 0x111   :  { %v421_v53 = vadd.f32 %v515_v38, %v373_v47  ;;  %v429_v54 = vadd.f32 %v531_v40, %v381_v48  ;;  %v374_v55 = vadd.f32 %v790_v35, %v351_v49  ;;  %v382_v56 = vadd.f32 %v790_v35, %v359_v50 }
 0x113   :  { %v437_v59 = vmax.f32 %v421_v53, 0.0  ;;  %v445_v60 = vmax.f32 %v429_v54, 0.0  ;;  %v422_v61 = vadd.f32 %v516_v44, %v374_v55  ;;  %v430_v62 = vadd.f32 %v532_v46, %v382_v56  ;;  %v547_v55 = vld [vmem:[%s893_s4 + $0x18] sm:$0xff]  }
 0x114   :  { %v288_v63 = vpop.f32.mrb[4].mxu0  ;;  %v320_v1 = vpop.f32.mrb[4].mxu1  ;;  %v540_v44 = vunpack.c.h.bf16 %v550_v24  ;;  %v551_v56 = vld [vmem:[%s893_s4 + $0x38] sm:$0xff]  }
 0x115   :  { %453 = vst [vmem:[%s895_s5] sm:$0xff] %v437_v59  ;;  %461 = vst [vmem:[%s895_s5 + $0x40] sm:$0xff] %v445_v60  ;;  %v438_v3 = vmax.f32 %v422_v61, 0.0  ;;  %v446_v4 = vmax.f32 %v430_v62, 0.0  ;;  %v352_v5 = vmul.f32 %v779_v31, %v288_v63  ;;  %v360_v6 = vmul.f32 %v779_v31, %v320_v1  ;;  %v290_v7 = vpop.f32.mrb[5].mxu0  ;;  %v322_v8 = vpop.f32.mrb[5].mxu1 }
 0x116   :  { %v291_v9 = vpop.f32.mrb[6].mxu0  ;;  %v323_v11 = vpop.f32.mrb[6].mxu1  ;;  %v527_v62 = vunpack.c.l.bf16 %v547_v55  ;;  %v528_v8 = vunpack.c.h.bf16 %v547_v55 }
 0x117   :  { %454 = vst [vmem:[%s895_s5 + $0x8] sm:$0xff] %v438_v3  ;;  %462 = vst [vmem:[%s895_s5 + $0x48] sm:$0xff] %v446_v4  ;;  %v375_v13 = vadd.f32 %v790_v35, %v352_v5  ;;  %v383_v14 = vadd.f32 %v790_v35, %v360_v6  ;;  %v353_v15 = vmul.f32 %v779_v31, %v291_v9  ;;  %v293_v17 = vpop.f32.mrb[7].mxu0  ;;  %v325_v18 = vpop.f32.mrb[7].mxu1 }
 0x118   :  { %v361_v16 = vmul.f32 %v779_v31, %v323_v11 }
 0x119   :  { %v423_v19 = vadd.f32 %v519_v0, %v375_v13  ;;  %v431_v20 = vadd.f32 %v535_v2, %v383_v14  ;;  %v376_v21 = vadd.f32 %v790_v35, %v353_v15  ;;  %v543_v0 = vunpack.c.l.bf16 %v551_v56 }
 0x11a   :  { %v384_v22 = vadd.f32 %v790_v35, %v361_v16 }
 0x11b   :  { %v439_v25 = vmax.f32 %v423_v19, 0.0  ;;  %v447_v26 = vmax.f32 %v431_v20, 0.0  ;;  %v424_v27 = vadd.f32 %v520_v10, %v376_v21  ;;  %v544_v10 = vunpack.c.h.bf16 %v551_v56 }
 0x11c   :  { %v432_v28 = vadd.f32 %v536_v12, %v384_v22  ;;  %v296_v29 = vpop.f32.mrb[8].mxu0  ;;  %v328_v32 = vpop.f32.mrb[8].mxu1 }
 0x11d   :  { %455 = vst [vmem:[%s895_s5 + $0x10] sm:$0xff] %v439_v25  ;;  %463 = vst [vmem:[%s895_s5 + $0x50] sm:$0xff] %v447_v26  ;;  %v440_v34 = vmax.f32 %v424_v27, 0.0  ;;  %v354_v37 = vmul.f32 %v779_v31, %v296_v29  ;;  %v362_v38 = vmul.f32 %v779_v31, %v328_v32  ;;  %v298_v39 = vpop.f32.mrb[9].mxu0  ;;  %v330_v40 = vpop.f32.mrb[9].mxu1 }
 0x11e   :  { %v448_v36 = vmax.f32 %v432_v28, 0.0  ;;  %v299_v41 = vpop.f32.mrb[10].mxu0  ;;  %v331_v43 = vpop.f32.mrb[10].mxu1 }
 0x11f   :  { %456 = vst [vmem:[%s895_s5 + $0x18] sm:$0xff] %v440_v34  ;;  %v377_v45 = vadd.f32 %v790_v35, %v354_v37  ;;  %v385_v46 = vadd.f32 %v790_v35, %v362_v38  ;;  %v355_v47 = vmul.f32 %v779_v31, %v299_v41  ;;  %v363_v48 = vmul.f32 %v779_v31, %v331_v43  ;;  %v301_v49 = vpop.f32.mrb[11].mxu0  ;;  %v333_v50 = vpop.f32.mrb[11].mxu1 }
 0x120   :  { %464 = vst [vmem:[%s895_s5 + $0x58] sm:$0xff] %v448_v36 }
 0x121   :  { %v425_v51 = vadd.f32 %v523_v30, %v377_v45  ;;  %v433_v52 = vadd.f32 %v539_v33, %v385_v46  ;;  %v378_v53 = vadd.f32 %v790_v35, %v355_v47  ;;  %v386_v54 = vadd.f32 %v790_v35, %v363_v48 }
 0x123   :  { %v441_v57 = vmax.f32 %v425_v51, 0.0  ;;  %v449_v58 = vmax.f32 %v433_v52, 0.0  ;;  %v426_v59 = vadd.f32 %v524_v42, %v378_v53  ;;  %v434_v60 = vadd.f32 %v540_v44, %v386_v54 }
 0x124   :  { %v304_v61 = vpop.f32.mrb[12].mxu0  ;;  %v336_v63 = vpop.f32.mrb[12].mxu1 }
 0x125   :  { %457 = vst [vmem:[%s895_s5 + $0x20] sm:$0xff] %v441_v57  ;;  %465 = vst [vmem:[%s895_s5 + $0x60] sm:$0xff] %v449_v58  ;;  %v442_v1 = vmax.f32 %v426_v59, 0.0  ;;  %v450_v2 = vmax.f32 %v434_v60, 0.0  ;;  %v356_v3 = vmul.f32 %v779_v31, %v304_v61  ;;  %v364_v4 = vmul.f32 %v779_v31, %v336_v63  ;;  %v306_v5 = vpop.f32.mrb[13].mxu0  ;;  %v338_v6 = vpop.f32.mrb[13].mxu1 }
 0x126   :  { %v307_v7 = vpop.f32.mrb[14].mxu0  ;;  %v339_v9 = vpop.f32.mrb[14].mxu1 }
 0x127   :  { %458 = vst [vmem:[%s895_s5 + $0x28] sm:$0xff] %v442_v1  ;;  %466 = vst [vmem:[%s895_s5 + $0x68] sm:$0xff] %v450_v2  ;;  %v379_v11 = vadd.f32 %v790_v35, %v356_v3  ;;  %v387_v12 = vadd.f32 %v790_v35, %v364_v4  ;;  %v357_v13 = vmul.f32 %v779_v31, %v307_v7  ;;  %v309_v15 = vpop.f32.mrb[15].mxu0  ;;  %v341_v16 = vpop.f32.mrb[15].mxu1 }
 0x128   :  { %v365_v14 = vmul.f32 %v779_v31, %v339_v9 }
 0x129   :  { %v427_v17 = vadd.f32 %v527_v62, %v379_v11  ;;  %v435_v18 = vadd.f32 %v543_v0, %v387_v12  ;;  %v380_v19 = vadd.f32 %v790_v35, %v357_v13 }
 0x12a   :  { %v388_v20 = vadd.f32 %v790_v35, %v365_v14 }
 0x12b   :  { %v443_v21 = vmax.f32 %v427_v17, 0.0  ;;  %v451_v22 = vmax.f32 %v435_v18, 0.0  ;;  %v428_v23 = vadd.f32 %v528_v8, %v380_v19 }
 0x12c   :  { %v436_v24 = vadd.f32 %v544_v10, %v388_v20 }
 0x12d   :  { %459 = vst [vmem:[%s895_s5 + $0x30] sm:$0xff] %v443_v21  ;;  %467 = vst [vmem:[%s895_s5 + $0x70] sm:$0xff] %v451_v22  ;;  %v444_v31 = vmax.f32 %v428_v23, 0.0 }
 0x12e   :  { %v452_v25 = vmax.f32 %v436_v24, 0.0 }
 0x12f   :  { %460 = vst [vmem:[%s895_s5 + $0x38] sm:$0xff] %v444_v31 }
 0x130   :  { %468 = vst [vmem:[%s895_s5 + $0x78] sm:$0xff] %v452_v25 }

// kernel: fwd.8
= control target key start
LH: loop header
LB: loop body
LE: loop exit
PB: predicated region body
PF: predicated region fallthrough
CT: control target
= control target key end

     0   :  { %v672_v0 = vmov 0   ;;  %vm218_vm0 = vcmask 785408   ;;  %s890_s1 = inlined_call_operand.vmem [shape: bf16[224,128], index: 1, kind: input, shape index: {}]   ;;  %s891_s0 = inlined_call_operand.vmem [shape: bf16[128,224], index: 0, kind: input, shape index: {}]   ;;  %s892_s2 = inlined_call_operand.vmem [shape: f32[1,128], index: 2, kind: input, shape index: {}]   ;;  %s893_s3 = inlined_call_operand.vmem [shape: f32[1,128], index: 3, kind: input, shape index: {}]   ;;  %s894_s4 = inlined_call_operand.vmem [shape: bf16[128,128], index: 4, kind: output, shape index: {}]  }
   0x1   :  { %243 = vmatprep.subr.bf16.mxu0 %v672_v0  ;;  %605 = vmatprep.subr.bf16.mxu1 %v672_v0  ;;  %v634_v1 = vld [vmem:[%s890_s1] sm:$0xff]   ;;  %v635_v2 = vld [vmem:[%s890_s1 + $0x8] sm:$0xff]   ;;  %v636_v3 = vld [vmem:[%s890_s1 + $0x10] sm:$0xff]  }
   0x2   :  { %244 = vmatpush1.bf16.msra.mxu0 %v634_v1  ;;  %619 = vmatpush1.bf16.msra.mxu1 %v634_v1  ;;  %v637_v4 = vld [vmem:[%s890_s1 + $0x18] sm:$0xff]   ;;  %v638_v5 = vld [vmem:[%s890_s1 + $0x20] sm:$0xff]   ;;  %v639_v8 = vld [vmem:[%s890_s1 + $0x28] sm:$0xff]  }
   0x3   :  { %245 = vmatprep.subr.bf16.mxu0 %v672_v0  ;;  %606 = vmatprep.subr.bf16.mxu1 %v672_v0  ;;  %v650_v6 = vld [vmem:[%s891_s0 + $0x4] ss:$8 sps:$4 sm:$0xff]   ;;  %v640_v9 = vld [vmem:[%s890_s1 + $0x30] sm:$0xff]   ;;  %v641_v10 = vld [vmem:[%s890_s1 + $0x38] sm:$0xff]  }
   0x4   :  { %v653_v7 = vld [vmem:[%s891_s0 + $0x44] ss:$8 sps:$4 sm:$0xff]   ;;  %516 = vmatprep.mubr.msk.bf16.mxu0 %vm218_vm0, %v650_v6  ;;  %v644_v13 = vld [vmem:[%s890_s1 + $0x50] sm:$0xff]   ;;  %v645_v14 = vld [vmem:[%s890_s1 + $0x58] sm:$0xff]  }
   0x5   :  { %520 = vmatprep.mubr.msk.bf16.mxu1 %vm218_vm0, %v653_v7  ;;  %v642_v11 = vld [vmem:[%s890_s1 + $0x40] sm:$0xff]   ;;  %v643_v12 = vld [vmem:[%s890_s1 + $0x48] sm:$0xff]   ;;  %v654_v19 = vld [vmem:[%s891_s0 + $0x14] ss:$8 sps:$4 sm:$0xff]  }
   0x6   :  { %246 = vmatpush1.bf16.msra.mxu0 %v635_v2  ;;  %620 = vmatpush1.bf16.msra.mxu1 %v635_v2  ;;  %v646_v15 = vld [vmem:[%s890_s1 + $0x60] sm:$0xff]   ;;  %v647_v16 = vld [vmem:[%s890_s1 + $0x68] sm:$0xff]   ;;  %v656_v20 = vld [vmem:[%s891_s0 + $0x54] ss:$8 sps:$4 sm:$0xff]  }
   0x7   :  { %247 = vmatprep.subr.bf16.mxu0 %v672_v0  ;;  %607 = vmatprep.subr.bf16.mxu1 %v672_v0  ;;  %v648_v17 = vld [vmem:[%s891_s0] ss:$8 sps:$4 sm:$0xff]   ;;  %v658_v21 = vld [vmem:[%s891_s0 + $0x10] ss:$8 sps:$4 sm:$0xff]   ;;  %v660_v23 = vld [vmem:[%s891_s0 + $0x24] ss:$8 sps:$4 sm:$0xff]  }
   0x8   :  { %v651_v18 = vld [vmem:[%s891_s0 + $0x40] ss:$8 sps:$4 sm:$0xff]   ;;  %v659_v22 = vld [vmem:[%s891_s0 + $0x50] ss:$8 sps:$4 sm:$0xff]   ;;  %v662_v24 = vld [vmem:[%s891_s0 + $0x64] ss:$8 sps:$4 sm:$0xff]  }
   0x9   :  { %v664_v25 = vld [vmem:[%s891_s0 + $0x20] ss:$8 sps:$4 sm:$0xff]   ;;  %v666_v27 = vld [vmem:[%s891_s0 + $0x34] ss:$8 sps:$4 sm:$0xff]   ;;  %v670_v29 = vld [vmem:[%s891_s0 + $0x30] ss:$8 sps:$4 sm:$0xff]  }
   0xa   :  { %248 = vmatpush1.bf16.msra.mxu0 %v636_v3  ;;  %621 = vmatpush1.bf16.msra.mxu1 %v636_v3  ;;  %v665_v26 = vld [vmem:[%s891_s0 + $0x60] ss:$8 sps:$4 sm:$0xff]   ;;  %v668_v28 = vld [vmem:[%s891_s0 + $0x74] ss:$8 sps:$4 sm:$0xff]   ;;  %v671_v30 = vld [vmem:[%s891_s0 + $0x70] ss:$8 sps:$4 sm:$0xff]  }
   0xb   :  { %249 = vmatprep.subr.bf16.mxu0 %v672_v0  ;;  %608 = vmatprep.subr.bf16.mxu1 %v672_v0  ;;  %v827_v31 = vld [vmem:[%s892_s2] ss:$0 sm:$0xff] }
   0xc   :  { %v832_v33 = vld [vmem:[%s893_s3] ss:$0 sm:$0xff] }
   0xe   :  { %250 = vmatpush1.bf16.msra.mxu0 %v637_v4  ;;  %622 = vmatpush1.bf16.msra.mxu1 %v637_v4 }
   0xf   :  { %251 = vmatprep.subr.bf16.mxu0 %v672_v0  ;;  %609 = vmatprep.subr.bf16.mxu1 %v672_v0 }
  0x12   :  { %252 = vmatpush1.bf16.msra.mxu0 %v638_v5  ;;  %623 = vmatpush1.bf16.msra.mxu1 %v638_v5 }
  0x13   :  { %253 = vmatprep.subr.bf16.mxu0 %v672_v0  ;;  %610 = vmatprep.subr.bf16.mxu1 %v672_v0 }
  0x16   :  { %254 = vmatpush1.bf16.msra.mxu0 %v639_v8  ;;  %624 = vmatpush1.bf16.msra.mxu1 %v639_v8 }
  0x17   :  { %255 = vmatprep.subr.bf16.mxu0 %v672_v0  ;;  %611 = vmatprep.subr.bf16.mxu1 %v672_v0 }
  0x1a   :  { %256 = vmatpush1.bf16.msra.mxu0 %v640_v9  ;;  %625 = vmatpush1.bf16.msra.mxu1 %v640_v9 }
  0x1b   :  { %257 = vmatprep.subr.bf16.mxu0 %v672_v0  ;;  %612 = vmatprep.subr.bf16.mxu1 %v672_v0 }
  0x1e   :  { %258 = vmatpush1.bf16.msra.mxu0 %v641_v10  ;;  %626 = vmatpush1.bf16.msra.mxu1 %v641_v10 }
  0x1f   :  { %259 = vmatprep.subr.bf16.mxu0 %v672_v0  ;;  %613 = vmatprep.subr.bf16.mxu1 %v672_v0 }
  0x22   :  { %260 = vmatpush1.bf16.msra.mxu0 %v642_v11  ;;  %627 = vmatpush1.bf16.msra.mxu1 %v642_v11 }
  0x23   :  { %261 = vmatprep.subr.bf16.mxu0 %v672_v0  ;;  %614 = vmatprep.subr.bf16.mxu1 %v672_v0 }
  0x26   :  { %262 = vmatpush1.bf16.msra.mxu0 %v643_v12  ;;  %628 = vmatpush1.bf16.msra.mxu1 %v643_v12 }
  0x27   :  { %263 = vmatprep.subr.bf16.mxu0 %v672_v0  ;;  %615 = vmatprep.subr.bf16.mxu1 %v672_v0 }
  0x2a   :  { %264 = vmatpush1.bf16.msra.mxu0 %v644_v13  ;;  %629 = vmatpush1.bf16.msra.mxu1 %v644_v13 }
  0x2b   :  { %265 = vmatprep.subr.bf16.mxu0 %v672_v0  ;;  %616 = vmatprep.subr.bf16.mxu1 %v672_v0 }
  0x2e   :  { %266 = vmatpush1.bf16.msra.mxu0 %v645_v14  ;;  %630 = vmatpush1.bf16.msra.mxu1 %v645_v14 }
  0x2f   :  { %267 = vmatprep.subr.bf16.mxu0 %v672_v0  ;;  %617 = vmatprep.subr.bf16.mxu1 %v672_v0 }
  0x32   :  { %268 = vmatpush1.bf16.msra.mxu0 %v646_v15  ;;  %631 = vmatpush1.bf16.msra.mxu1 %v646_v15 }
  0x33   :  { %269 = vmatprep.subr.bf16.mxu0 %v672_v0  ;;  %618 = vmatprep.subr.bf16.mxu1 %v672_v0 }
  0x36   :  { %270 = vmatpush1.bf16.msra.mxu0 %v647_v16  ;;  %632 = vmatpush1.bf16.msra.mxu1 %v647_v16 }
  0x39   :  { %276 = vmatmul.mubr.bf16.vlgmr.msra.gmra.mrb[0].mxu0 %v648_v17  ;;  %308 = vmatmul.mubr.bf16.vlgmr.msra.gmra.mrb[0].mxu1 %v651_v18 }
  0x3a   :  { %517 = vmatprep.mubr.msk.bf16.mxu0 %vm218_vm0, %v654_v19  ;;  %521 = vmatprep.mubr.msk.bf16.mxu1 %vm218_vm0, %v656_v20 }
  0x41   :  { %284 = vmatmul.mubr.bf16.gmra.mrb[4].mxu0 %v658_v21  ;;  %316 = vmatmul.mubr.bf16.gmra.mrb[4].mxu1 %v659_v22 }
  0x42   :  { %518 = vmatprep.mubr.msk.bf16.mxu0 %vm218_vm0, %v660_v23  ;;  %522 = vmatprep.mubr.msk.bf16.mxu1 %vm218_vm0, %v662_v24 }
  0x49   :  { %292 = vmatmul.mubr.bf16.gmra.mrb[8].mxu0 %v664_v25  ;;  %324 = vmatmul.mubr.bf16.gmra.mrb[8].mxu1 %v665_v26 }
  0x4a   :  { %519 = vmatprep.mubr.msk.bf16.mxu0 %vm218_vm0, %v666_v27  ;;  %523 = vmatprep.mubr.msk.bf16.mxu1 %vm218_vm0, %v668_v28 }
  0x51   :  { %300 = vmatmul.mubr.bf16.gmra.mrb[12].mxu0 %v670_v29  ;;  %332 = vmatmul.mubr.bf16.gmra.mrb[12].mxu1 %v671_v30 }
 0x10c   :  { %v277_v32 = vpop.f32.mrb[0].mxu0  ;;  %v309_v34 = vpop.f32.mrb[0].mxu1 }
 0x10d   :  { %v347_v35 = vmul.f32 %v827_v31, %v277_v32  ;;  %v355_v36 = vmul.f32 %v827_v31, %v309_v34  ;;  %v279_v37 = vpop.f32.mrb[1].mxu0  ;;  %v311_v38 = vpop.f32.mrb[1].mxu1 }
 0x10e   :  { %v280_v39 = vpop.f32.mrb[2].mxu0  ;;  %v312_v40 = vpop.f32.mrb[2].mxu1 }
 0x10f   :  { %v370_v41 = vadd.f32 %v832_v33, %v347_v35  ;;  %v378_v42 = vadd.f32 %v832_v33, %v355_v36  ;;  %v348_v43 = vmul.f32 %v827_v31, %v280_v39  ;;  %v356_v44 = vmul.f32 %v827_v31, %v312_v40  ;;  %v282_v45 = vpop.f32.mrb[3].mxu0  ;;  %v314_v46 = vpop.f32.mrb[3].mxu1 }
 0x111   :  { %v371_v47 = vadd.f32 %v832_v33, %v348_v43  ;;  %v379_v48 = vadd.f32 %v832_v33, %v356_v44  ;;  %v386_v49 = vmax.f32 %v370_v41, 0.0  ;;  %v394_v50 = vmax.f32 %v378_v42, 0.0 }
 0x113   :  { %v387_v51 = vmax.f32 %v371_v47, 0.0  ;;  %v395_v52 = vmax.f32 %v379_v48, 0.0 }
 0x114   :  { %v285_v53 = vpop.f32.mrb[4].mxu0  ;;  %v317_v54 = vpop.f32.mrb[4].mxu1 }
 0x115   :  { %v561_v55 = vpack.c.bf16 %v387_v51, %v386_v49  ;;  %v581_v56 = vpack.c.bf16 %v395_v52, %v394_v50  ;;  %v349_v57 = vmul.f32 %v827_v31, %v285_v53  ;;  %v357_v58 = vmul.f32 %v827_v31, %v317_v54  ;;  %v287_v59 = vpop.f32.mrb[5].mxu0  ;;  %v319_v60 = vpop.f32.mrb[5].mxu1 }
 0x116   :  { %v288_v61 = vpop.f32.mrb[6].mxu0  ;;  %v320_v62 = vpop.f32.mrb[6].mxu1 }
 0x117   :  { %562 = vst [vmem:[%s894_s4] sm:$0xff] %v561_v55   ;;  %601 = vst [vmem:[%s894_s4 + $0x20] sm:$0xff] %v581_v56   ;;  %v372_v63 = vadd.f32 %v832_v33, %v349_v57  ;;  %v380_v0 = vadd.f32 %v832_v33, %v357_v58  ;;  %v350_v1 = vmul.f32 %v827_v31, %v288_v61  ;;  %v290_v3 = vpop.f32.mrb[7].mxu0  ;;  %v322_v4 = vpop.f32.mrb[7].mxu1 }
 0x118   :  { %v358_v2 = vmul.f32 %v827_v31, %v320_v62 }
 0x119   :  { %v373_v5 = vadd.f32 %v832_v33, %v350_v1  ;;  %v388_v7 = vmax.f32 %v372_v63, 0.0  ;;  %v396_v8 = vmax.f32 %v380_v0, 0.0 }
 0x11a   :  { %v381_v6 = vadd.f32 %v832_v33, %v358_v2 }
 0x11b   :  { %v389_v9 = vmax.f32 %v373_v5, 0.0 }
 0x11c   :  { %v397_v10 = vmax.f32 %v381_v6, 0.0  ;;  %v293_v11 = vpop.f32.mrb[8].mxu0  ;;  %v325_v12 = vpop.f32.mrb[8].mxu1 }
 0x11d   :  { %v566_v13 = vpack.c.bf16 %v389_v9, %v388_v7  ;;  %v351_v15 = vmul.f32 %v827_v31, %v293_v11  ;;  %v359_v16 = vmul.f32 %v827_v31, %v325_v12  ;;  %v295_v17 = vpop.f32.mrb[9].mxu0  ;;  %v327_v18 = vpop.f32.mrb[9].mxu1 }
 0x11e   :  { %v586_v14 = vpack.c.bf16 %v397_v10, %v396_v8  ;;  %v296_v19 = vpop.f32.mrb[10].mxu0  ;;  %v328_v20 = vpop.f32.mrb[10].mxu1 }
 0x11f   :  { %598 = vst [vmem:[%s894_s4 + $0x8] sm:$0xff] %v566_v13   ;;  %v374_v21 = vadd.f32 %v832_v33, %v351_v15  ;;  %v382_v22 = vadd.f32 %v832_v33, %v359_v16  ;;  %v352_v23 = vmul.f32 %v827_v31, %v296_v19  ;;  %v360_v24 = vmul.f32 %v827_v31, %v328_v20  ;;  %v298_v25 = vpop.f32.mrb[11].mxu0  ;;  %v330_v26 = vpop.f32.mrb[11].mxu1 }
 0x120   :  { %602 = vst [vmem:[%s894_s4 + $0x28] sm:$0xff] %v586_v14  }
 0x121   :  { %v375_v27 = vadd.f32 %v832_v33, %v352_v23  ;;  %v383_v28 = vadd.f32 %v832_v33, %v360_v24  ;;  %v390_v29 = vmax.f32 %v374_v21, 0.0  ;;  %v398_v30 = vmax.f32 %v382_v22, 0.0 }
 0x123   :  { %v391_v32 = vmax.f32 %v375_v27, 0.0  ;;  %v399_v34 = vmax.f32 %v383_v28, 0.0 }
 0x124   :  { %v301_v35 = vpop.f32.mrb[12].mxu0  ;;  %v333_v36 = vpop.f32.mrb[12].mxu1 }
 0x125   :  { %v571_v37 = vpack.c.bf16 %v391_v32, %v390_v29  ;;  %v591_v38 = vpack.c.bf16 %v399_v34, %v398_v30  ;;  %v353_v39 = vmul.f32 %v827_v31, %v301_v35  ;;  %v361_v40 = vmul.f32 %v827_v31, %v333_v36  ;;  %v303_v41 = vpop.f32.mrb[13].mxu0  ;;  %v335_v42 = vpop.f32.mrb[13].mxu1 }
 0x126   :  { %v304_v43 = vpop.f32.mrb[14].mxu0  ;;  %v336_v44 = vpop.f32.mrb[14].mxu1 }
 0x127   :  { %599 = vst [vmem:[%s894_s4 + $0x10] sm:$0xff] %v571_v37   ;;  %603 = vst [vmem:[%s894_s4 + $0x30] sm:$0xff] %v591_v38   ;;  %v376_v45 = vadd.f32 %v832_v33, %v353_v39  ;;  %v384_v46 = vadd.f32 %v832_v33, %v361_v40  ;;  %v354_v47 = vmul.f32 %v827_v31, %v304_v43  ;;  %v306_v49 = vpop.f32.mrb[15].mxu0  ;;  %v338_v50 = vpop.f32.mrb[15].mxu1 }
 0x128   :  { %v362_v48 = vmul.f32 %v827_v31, %v336_v44 }
 0x129   :  { %v377_v51 = vadd.f32 %v832_v33, %v354_v47  ;;  %v392_v53 = vmax.f32 %v376_v45, 0.0  ;;  %v400_v54 = vmax.f32 %v384_v46, 0.0 }
 0x12a   :  { %v385_v52 = vadd.f32 %v832_v33, %v362_v48 }
 0x12b   :  { %v393_v55 = vmax.f32 %v377_v51, 0.0 }
 0x12c   :  { %v401_v56 = vmax.f32 %v385_v52, 0.0 }
 0x12d   :  { %v576_v57 = vpack.c.bf16 %v393_v55, %v392_v53 }
 0x12e   :  { %v596_v58 = vpack.c.bf16 %v401_v56, %v400_v54 }
 0x12f   :  { %600 = vst [vmem:[%s894_s4 + $0x18] sm:$0xff] %v576_v57  }
 0x130   :  { %604 = vst [vmem:[%s894_s4 + $0x38] sm:$0xff] %v596_v58  }

// kernel: fwd.9
= control target key start
LH: loop header
LB: loop body
LE: loop exit
PB: predicated region body
PF: predicated region fallthrough
CT: control target
= control target key end

     0   :  { %v604_v1 = vmov 0   ;;  %vm222_vm0 = vcmask 785408   ;;  %s866_s0 = inlined_call_operand.vmem [shape: bf16[128,224], index: 0, kind: input, shape index: {}]   ;;  %s867_s1 = inlined_call_operand.vmem [shape: bf16[224,128], index: 1, kind: input, shape index: {}]   ;;  %s868_s2 = inlined_call_operand.vmem [shape: f32[1,128], index: 2, kind: input, shape index: {}]   ;;  %s869_s3 = inlined_call_operand.vmem [shape: f32[1,128], index: 3, kind: input, shape index: {}]   ;;  %s870_s4 = inlined_call_operand.vmem [shape: f32[128,128], index: 4, kind: input, shape index: {}]   ;;  %s871_s5 = inlined_call_operand.hbm [shape: f32[128,128], index: 5, kind: output, shape index: {}]  }
   0x1   :  { %v542_v0 = vld [vmem:[%s867_s1] sm:$0xff]   ;;  %247 = vmatprep.subr.bf16.mxu0 %v604_v1  ;;  %510 = vmatprep.subr.bf16.mxu1 %v604_v1  ;;  %v543_v2 = vld [vmem:[%s867_s1 + $0x8] sm:$0xff]   ;;  %v544_v3 = vld [vmem:[%s867_s1 + $0x10] sm:$0xff]  }
   0x2   :  { %248 = vmatpush1.bf16.msra.mxu0 %v542_v0  ;;  %524 = vmatpush1.bf16.msra.mxu1 %v542_v0  ;;  %v545_v4 = vld [vmem:[%s867_s1 + $0x18] sm:$0xff]   ;;  %v546_v5 = vld [vmem:[%s867_s1 + $0x20] sm:$0xff]   ;;  %v547_v8 = vld [vmem:[%s867_s1 + $0x28] sm:$0xff]  }
   0x3   :  { %249 = vmatprep.subr.bf16.mxu0 %v604_v1  ;;  %511 = vmatprep.subr.bf16.mxu1 %v604_v1  ;;  %v558_v6 = vld [vmem:[%s866_s0 + $0x4] ss:$8 sps:$4 sm:$0xff]   ;;  %v548_v9 = vld [vmem:[%s867_s1 + $0x30] sm:$0xff]  }
   0x4   :  { %v561_v7 = vld [vmem:[%s866_s0 + $0x44] ss:$8 sps:$4 sm:$0xff]   ;;  %500 = vmatprep.mubr.msk.bf16.mxu0 %vm222_vm0, %v558_v6 }
   0x5   :  { %504 = vmatprep.mubr.msk.bf16.mxu1 %vm222_vm0, %v561_v7 }
   0x6   :  { %250 = vmatpush1.bf16.msra.mxu0 %v543_v2  ;;  %525 = vmatpush1.bf16.msra.mxu1 %v543_v2 }
   0x7   :  { %251 = vmatprep.subr.bf16.mxu0 %v604_v1  ;;  %512 = vmatprep.subr.bf16.mxu1 %v604_v1 }
   0xa   :  { %252 = vmatpush1.bf16.msra.mxu0 %v544_v3  ;;  %526 = vmatpush1.bf16.msra.mxu1 %v544_v3 }
   0xb   :  { %253 = vmatprep.subr.bf16.mxu0 %v604_v1  ;;  %513 = vmatprep.subr.bf16.mxu1 %v604_v1 }
   0xe   :  { %254 = vmatpush1.bf16.msra.mxu0 %v545_v4  ;;  %527 = vmatpush1.bf16.msra.mxu1 %v545_v4 }
   0xf   :  { %255 = vmatprep.subr.bf16.mxu0 %v604_v1  ;;  %514 = vmatprep.subr.bf16.mxu1 %v604_v1 }
  0x12   :  { %256 = vmatpush1.bf16.msra.mxu0 %v546_v5  ;;  %528 = vmatpush1.bf16.msra.mxu1 %v546_v5 }
  0x13   :  { %257 = vmatprep.subr.bf16.mxu0 %v604_v1  ;;  %515 = vmatprep.subr.bf16.mxu1 %v604_v1 }
  0x16   :  { %258 = vmatpush1.bf16.msra.mxu0 %v547_v8  ;;  %529 = vmatpush1.bf16.msra.mxu1 %v547_v8 }
  0x17   :  { %259 = vmatprep.subr.bf16.mxu0 %v604_v1  ;;  %516 = vmatprep.subr.bf16.mxu1 %v604_v1 }
  0x18   :  { %10 = vsyncpa [#allocation3], 0  ;;  %v549_v10 = vld [vmem:[%s867_s1 + $0x38] sm:$0xff]   ;;  %v550_v11 = vld [vmem:[%s867_s1 + $0x40] sm:$0xff]  }
  0x19   :  { %v551_v12 = vld [vmem:[%s867_s1 + $0x48] sm:$0xff]   ;;  %v552_v13 = vld [vmem:[%s867_s1 + $0x50] sm:$0xff]   ;;  %v553_v14 = vld [vmem:[%s867_s1 + $0x58] sm:$0xff]  }
  0x1a   :  { %260 = vmatpush1.bf16.msra.mxu0 %v548_v9  ;;  %530 = vmatpush1.bf16.msra.mxu1 %v548_v9  ;;  %v554_v15 = vld [vmem:[%s867_s1 + $0x60] sm:$0xff]   ;;  %v555_v16 = vld [vmem:[%s867_s1 + $0x68] sm:$0xff]   ;;  %v562_v19 = vld [vmem:[%s866_s0 + $0x14] ss:$8 sps:$4 sm:$0xff]  }
  0x1b   :  { %261 = vmatprep.subr.bf16.mxu0 %v604_v1  ;;  %517 = vmatprep.subr.bf16.mxu1 %v604_v1  ;;  %v556_v17 = vld [vmem:[%s866_s0] ss:$8 sps:$4 sm:$0xff]   ;;  %v564_v20 = vld [vmem:[%s866_s0 + $0x54] ss:$8 sps:$4 sm:$0xff]   ;;  %v566_v21 = vld [vmem:[%s866_s0 + $0x10] ss:$8 sps:$4 sm:$0xff]  }
  0x1c   :  { %v559_v18 = vld [vmem:[%s866_s0 + $0x40] ss:$8 sps:$4 sm:$0xff]   ;;  %v567_v22 = vld [vmem:[%s866_s0 + $0x50] ss:$8 sps:$4 sm:$0xff]   ;;  %v568_v23 = vld [vmem:[%s866_s0 + $0x24] ss:$8 sps:$4 sm:$0xff]  }
  0x1d   :  { %v570_v24 = vld [vmem:[%s866_s0 + $0x64] ss:$8 sps:$4 sm:$0xff]   ;;  %v572_v25 = vld [vmem:[%s866_s0 + $0x20] ss:$8 sps:$4 sm:$0xff]   ;;  %v574_v27 = vld [vmem:[%s866_s0 + $0x34] ss:$8 sps:$4 sm:$0xff]  }
  0x1e   :  { %262 = vmatpush1.bf16.msra.mxu0 %v549_v10  ;;  %531 = vmatpush1.bf16.msra.mxu1 %v549_v10  ;;  %v573_v26 = vld [vmem:[%s866_s0 + $0x60] ss:$8 sps:$4 sm:$0xff]   ;;  %v576_v28 = vld [vmem:[%s866_s0 + $0x74] ss:$8 sps:$4 sm:$0xff]   ;;  %v578_v29 = vld [vmem:[%s866_s0 + $0x30] ss:$8 sps:$4 sm:$0xff]  }
  0x1f   :  { %263 = vmatprep.subr.bf16.mxu0 %v604_v1  ;;  %518 = vmatprep.subr.bf16.mxu1 %v604_v1  ;;  %v579_v30 = vld [vmem:[%s866_s0 + $0x70] ss:$8 sps:$4 sm:$0xff]   ;;  %v767_v31 = vld [vmem:[%s868_s2] ss:$0 sm:$0xff]  ;;  %v391_v49 = vld [vmem:[%s870_s4 + $0x8] sm:$0xff]  ;;  %s605_s2 = smov [#allocation2]  }
  0x20   :  { %v772_v33 = vld [vmem:[%s869_s3] ss:$0 sm:$0xff]  ;;  %v399_v50 = vld [vmem:[%s870_s4 + $0x48] sm:$0xff]  ;;  %v392_v3 = vld [vmem:[%s870_s4 + $0x10] sm:$0xff]  ;;  %s459_s3 = sshll.u32 %s605_s2, 4  ;;  %s460_s3 = int_to_ptr.vmem [resolvable:$true] %s459_s3 }
  0x21   :  { %v390_v39 = vld [vmem:[%s870_s4] sm:$0xff]  ;;  %v400_v4 = vld [vmem:[%s870_s4 + $0x50] sm:$0xff]  ;;  %p585_p1 = scmp.lt.s32.totalorder %s460_s3, %s460_s3 }
  0x22   :  { %264 = vmatpush1.bf16.msra.mxu0 %v550_v11  ;;  %532 = vmatpush1.bf16.msra.mxu1 %v550_v11  ;;  %v398_v40 = vld [vmem:[%s870_s4 + $0x40] sm:$0xff] }
  0x23   :  { %265 = vmatprep.subr.bf16.mxu0 %v604_v1  ;;  %519 = vmatprep.subr.bf16.mxu1 %v604_v1 }
  0x26   :  { %266 = vmatpush1.bf16.msra.mxu0 %v551_v12  ;;  %533 = vmatpush1.bf16.msra.mxu1 %v551_v12 }
  0x27   :  { %267 = vmatprep.subr.bf16.mxu0 %v604_v1  ;;  %520 = vmatprep.subr.bf16.mxu1 %v604_v1 }
  0x2a   :  { %268 = vmatpush1.bf16.msra.mxu0 %v552_v13  ;;  %534 = vmatpush1.bf16.msra.mxu1 %v552_v13  ;;  %v393_v13 = vld [vmem:[%s870_s4 + $0x18] sm:$0xff] }
  0x2b   :  { %269 = vmatprep.subr.bf16.mxu0 %v604_v1  ;;  %521 = vmatprep.subr.bf16.mxu1 %v604_v1 }
  0x2e   :  { %270 = vmatpush1.bf16.msra.mxu0 %v553_v14  ;;  %535 = vmatpush1.bf16.msra.mxu1 %v553_v14  ;;  %v401_v14 = vld [vmem:[%s870_s4 + $0x58] sm:$0xff] }
  0x2f   :  { %271 = vmatprep.subr.bf16.mxu0 %v604_v1  ;;  %522 = vmatprep.subr.bf16.mxu1 %v604_v1 }
  0x32   :  { %272 = vmatpush1.bf16.msra.mxu0 %v554_v15  ;;  %536 = vmatpush1.bf16.msra.mxu1 %v554_v15 }
  0x33   :  { %273 = vmatprep.subr.bf16.mxu0 %v604_v1  ;;  %523 = vmatprep.subr.bf16.mxu1 %v604_v1 }
  0x36   :  { %274 = vmatpush1.bf16.msra.mxu0 %v555_v16  ;;  %537 = vmatpush1.bf16.msra.mxu1 %v555_v16 }
  0x39   :  { %280 = vmatmul.mubr.bf16.vlgmr.msra.gmra.mrb[0].mxu0 %v556_v17  ;;  %312 = vmatmul.mubr.bf16.vlgmr.msra.gmra.mrb[0].mxu1 %v559_v18 }
  0x3a   :  { %501 = vmatprep.mubr.msk.bf16.mxu0 %vm222_vm0, %v562_v19  ;;  %505 = vmatprep.mubr.msk.bf16.mxu1 %vm222_vm0, %v564_v20 }
  0x41   :  { %288 = vmatmul.mubr.bf16.gmra.mrb[4].mxu0 %v566_v21  ;;  %320 = vmatmul.mubr.bf16.gmra.mrb[4].mxu1 %v567_v22 }
  0x42   :  { %502 = vmatprep.mubr.msk.bf16.mxu0 %vm222_vm0, %v568_v23  ;;  %506 = vmatprep.mubr.msk.bf16.mxu1 %vm222_vm0, %v570_v24 }
  0x49   :  { %296 = vmatmul.mubr.bf16.gmra.mrb[8].mxu0 %v572_v25  ;;  %328 = vmatmul.mubr.bf16.gmra.mrb[8].mxu1 %v573_v26 }
  0x4a   :  { %503 = vmatprep.mubr.msk.bf16.mxu0 %vm222_vm0, %v574_v27  ;;  %507 = vmatprep.mubr.msk.bf16.mxu1 %vm222_vm0, %v576_v28 }
  0x51   :  { %304 = vmatmul.mubr.bf16.gmra.mrb[12].mxu0 %v578_v29  ;;  %336 = vmatmul.mubr.bf16.gmra.mrb[12].mxu1 %v579_v30 }
 0x10c   :  { %v281_v32 = vpop.f32.mrb[0].mxu0  ;;  %v313_v34 = vpop.f32.mrb[0].mxu1 }
 0x10d   :  { %v351_v35 = vmul.f32 %v767_v31, %v281_v32  ;;  %v359_v36 = vmul.f32 %v767_v31, %v313_v34  ;;  %v283_v37 = vpop.f32.mrb[1].mxu0  ;;  %v315_v38 = vpop.f32.mrb[1].mxu1  ;;  %v394_v32 = vld [vmem:[%s870_s4 + $0x20] sm:$0xff] }
 0x10e   :  { %v284_v41 = vpop.f32.mrb[2].mxu0  ;;  %v316_v42 = vpop.f32.mrb[2].mxu1  ;;  %v402_v34 = vld [vmem:[%s870_s4 + $0x60] sm:$0xff] }
 0x10f   :  { %v374_v43 = vadd.f32 %v772_v33, %v351_v35  ;;  %v382_v44 = vadd.f32 %v772_v33, %v359_v36  ;;  %v352_v45 = vmul.f32 %v767_v31, %v284_v41  ;;  %v360_v46 = vmul.f32 %v767_v31, %v316_v42  ;;  %v286_v47 = vpop.f32.mrb[3].mxu0  ;;  %v318_v48 = vpop.f32.mrb[3].mxu1 }
 0x111   :  { %v406_v51 = vadd.f32 %v390_v39, %v374_v43  ;;  %v414_v52 = vadd.f32 %v398_v40, %v382_v44  ;;  %v375_v53 = vadd.f32 %v772_v33, %v352_v45  ;;  %v383_v54 = vadd.f32 %v772_v33, %v360_v46  ;;  %v395_v43 = vld [vmem:[%s870_s4 + $0x28] sm:$0xff] }
 0x112   :  { %v403_v44 = vld [vmem:[%s870_s4 + $0x68] sm:$0xff] }
 0x113   :  { %v422_v55 = vmax.f32 %v406_v51, 0.0  ;;  %v430_v56 = vmax.f32 %v414_v52, 0.0  ;;  %v407_v57 = vadd.f32 %v391_v49, %v375_v53  ;;  %v415_v58 = vadd.f32 %v399_v50, %v383_v54 }
 0x114   :  { %v289_v59 = vpop.f32.mrb[4].mxu0  ;;  %v321_v60 = vpop.f32.mrb[4].mxu1 }
 0x115   :  { %438 = vst [vmem:[#allocation2] sm:$0xff] %v422_v55  ;;  %446 = vst [vmem:[#allocation2 + $0x40] sm:$0xff] %v430_v56  ;;  %v423_v61 = vmax.f32 %v407_v57, 0.0  ;;  %v431_v62 = vmax.f32 %v415_v58, 0.0  ;;  %v353_v63 = vmul.f32 %v767_v31, %v289_v59  ;;  %v361_v0 = vmul.f32 %v767_v31, %v321_v60  ;;  %v291_v1 = vpop.f32.mrb[5].mxu0  ;;  %v323_v2 = vpop.f32.mrb[5].mxu1 }
 0x116   :  { %v292_v5 = vpop.f32.mrb[6].mxu0  ;;  %v324_v6 = vpop.f32.mrb[6].mxu1 }
 0x117   :  { %439 = vst [vmem:[#allocation2 + $0x8] sm:$0xff] %v423_v61  ;;  %447 = vst [vmem:[#allocation2 + $0x48] sm:$0xff] %v431_v62  ;;  %v376_v7 = vadd.f32 %v772_v33, %v353_v63  ;;  %v384_v8 = vadd.f32 %v772_v33, %v361_v0  ;;  %v354_v9 = vmul.f32 %v767_v31, %v292_v5  ;;  %v294_v11 = vpop.f32.mrb[7].mxu0  ;;  %v326_v12 = vpop.f32.mrb[7].mxu1  ;;  %v396_v61 = vld [vmem:[%s870_s4 + $0x30] sm:$0xff] }
 0x118   :  { %v362_v10 = vmul.f32 %v767_v31, %v324_v6  ;;  %v404_v62 = vld [vmem:[%s870_s4 + $0x70] sm:$0xff] }
 0x119   :  { %v408_v15 = vadd.f32 %v392_v3, %v376_v7  ;;  %v416_v16 = vadd.f32 %v400_v4, %v384_v8  ;;  %v377_v17 = vadd.f32 %v772_v33, %v354_v9  ;;  %v397_v7 = vld [vmem:[%s870_s4 + $0x38] sm:$0xff] }
 0x11a   :  { %v385_v18 = vadd.f32 %v772_v33, %v362_v10  ;;  %v405_v8 = vld [vmem:[%s870_s4 + $0x78] sm:$0xff]  ;;  %s580_s4 = scalar_lea.vmem %s460_s3, 2048 }
 0x11b   :  { %v424_v19 = vmax.f32 %v408_v15, 0.0  ;;  %v432_v20 = vmax.f32 %v416_v16, 0.0  ;;  %v409_v21 = vadd.f32 %v393_v13, %v377_v17  ;;  %p581_p0 = scmp.ne.s32.totalorder %s460_s3, %s580_s4  ;;  %p586_p2 = scmp.lt.s32.totalorder %s580_s4, %s580_s4 }
 0x11c   :  { %v417_v22 = vadd.f32 %v401_v14, %v385_v18  ;;  %v297_v23 = vpop.f32.mrb[8].mxu0  ;;  %v329_v24 = vpop.f32.mrb[8].mxu1 }
 0x11d   :  { %440 = vst [vmem:[#allocation2 + $0x10] sm:$0xff] %v424_v19  ;;  %448 = vst [vmem:[#allocation2 + $0x50] sm:$0xff] %v432_v20  ;;  %v425_v25 = vmax.f32 %v409_v21, 0.0  ;;  %v355_v27 = vmul.f32 %v767_v31, %v297_v23  ;;  %v363_v28 = vmul.f32 %v767_v31, %v329_v24  ;;  %v299_v29 = vpop.f32.mrb[9].mxu0  ;;  %v331_v30 = vpop.f32.mrb[9].mxu1  ;;  %p587_p3 = por %p586_p2, %p585_p1 }
 0x11e   :  { %v433_v26 = vmax.f32 %v417_v22, 0.0  ;;  %v300_v35 = vpop.f32.mrb[10].mxu0  ;;  %v332_v36 = vpop.f32.mrb[10].mxu1 }
 0x11f   :  { %441 = vst [vmem:[#allocation2 + $0x18] sm:$0xff] %v425_v25  ;;  %v378_v37 = vadd.f32 %v772_v33, %v355_v27  ;;  %v386_v38 = vadd.f32 %v772_v33, %v363_v28  ;;  %v356_v39 = vmul.f32 %v767_v31, %v300_v35  ;;  %v364_v40 = vmul.f32 %v767_v31, %v332_v36  ;;  %v302_v41 = vpop.f32.mrb[11].mxu0  ;;  %v334_v42 = vpop.f32.mrb[11].mxu1  ;;  %p588_p4 = pnand %p587_p3, %p581_p0 }
 0x120   :  { %449 = vst [vmem:[#allocation2 + $0x58] sm:$0xff] %v433_v26 }
 0x121   :  { %v410_v45 = vadd.f32 %v394_v32, %v378_v37  ;;  %v418_v46 = vadd.f32 %v402_v34, %v386_v38  ;;  %v379_v47 = vadd.f32 %v772_v33, %v356_v39  ;;  %v387_v48 = vadd.f32 %v772_v33, %v364_v40 }
 0x123   :  { %v426_v49 = vmax.f32 %v410_v45, 0.0  ;;  %v434_v50 = vmax.f32 %v418_v46, 0.0  ;;  %v411_v51 = vadd.f32 %v395_v43, %v379_v47  ;;  %v419_v52 = vadd.f32 %v403_v44, %v387_v48 }
 0x124   :  { %v305_v53 = vpop.f32.mrb[12].mxu0  ;;  %v337_v54 = vpop.f32.mrb[12].mxu1 }
 0x125   :  { %442 = vst [vmem:[#allocation2 + $0x20] sm:$0xff] %v426_v49  ;;  %450 = vst [vmem:[#allocation2 + $0x60] sm:$0xff] %v434_v50  ;;  %v427_v55 = vmax.f32 %v411_v51, 0.0  ;;  %v435_v56 = vmax.f32 %v419_v52, 0.0  ;;  %v357_v57 = vmul.f32 %v767_v31, %v305_v53  ;;  %v365_v58 = vmul.f32 %v767_v31, %v337_v54  ;;  %v307_v59 = vpop.f32.mrb[13].mxu0  ;;  %v339_v60 = vpop.f32.mrb[13].mxu1 }
 0x126   :  { %v308_v63 = vpop.f32.mrb[14].mxu0  ;;  %v340_v0 = vpop.f32.mrb[14].mxu1 }
 0x127   :  { %443 = vst [vmem:[#allocation2 + $0x28] sm:$0xff] %v427_v55  ;;  %451 = vst [vmem:[#allocation2 + $0x68] sm:$0xff] %v435_v56  ;;  %v380_v1 = vadd.f32 %v772_v33, %v357_v57  ;;  %v388_v2 = vadd.f32 %v772_v33, %v365_v58  ;;  %v358_v3 = vmul.f32 %v767_v31, %v308_v63  ;;  %v310_v5 = vpop.f32.mrb[15].mxu0  ;;  %v342_v6 = vpop.f32.mrb[15].mxu1 }
 0x128   :  { %v366_v4 = vmul.f32 %v767_v31, %v340_v0 }
 0x129   :  { %v412_v9 = vadd.f32 %v396_v61, %v380_v1  ;;  %v420_v10 = vadd.f32 %v404_v62, %v388_v2  ;;  %v381_v11 = vadd.f32 %v772_v33, %v358_v3 }
 0x12a   :  { %v389_v12 = vadd.f32 %v772_v33, %v366_v4 }
 0x12b   :  { %v428_v13 = vmax.f32 %v412_v9, 0.0  ;;  %v436_v31 = vmax.f32 %v420_v10, 0.0  ;;  %v413_v14 = vadd.f32 %v397_v7, %v381_v11 }
 0x12c   :  { %v421_v15 = vadd.f32 %v405_v8, %v389_v12 }
 0x12d   :  { %444 = vst [vmem:[#allocation2 + $0x30] sm:$0xff] %v428_v13  ;;  %452 = vst [vmem:[#allocation2 + $0x70] sm:$0xff] %v436_v31  ;;  %v429_v16 = vmax.f32 %v413_v14, 0.0 }
 0x12e   :  { %v437_v17 = vmax.f32 %v421_v15, 0.0 }
 0x12f   :  { %445 = vst [vmem:[#allocation2 + $0x38] sm:$0xff] %v429_v16 }
 0x130   :  { %453 = vst [vmem:[#allocation2 + $0x78] sm:$0xff] %v437_v17 }
 0x131   :  { %591 = shalt.err (!%p588_p4)
}
 0x132   :  { %s592_s9 = scalar_lea.hbm %s871_s5, 2048 }
 0x133   :  { %p593_p5 = scmp.ne.s32.totalorder %s871_s5, %s592_s9  ;;  %p596_p6 = scmp.lt.u32.totalorder %s592_s9, %s871_s5 }
 0x135   :  { %p598_p7 = pnand %p596_p6, %p593_p5 }
 0x137   :  { %601 = shalt.err (!%p598_p7)
}
 0x138   :  { %s606_s14 = smov 128   ;;  %s607_s15 = smov 8  }
 0x139   :  { %465 = dma.vmem_to_hbm [thread:$0]  %s460_s3, 2048, %s871_s5, [#allocation3], %s606_s14, %s606_s14, %s607_s15  }
 0x13a   :  { %602 = dma.done.wait [#allocation3], 2048  }
 0x13b   :  { %603 = vsyncadd [#allocation3], 4294965248 }
 0x13c   :  { %469 = vsyncpa [#allocation3], 1 }

</bundles_post_ra>
